<compile_context>
chip_gen: v7x
topology: tpu7x:2x2x1
jax: 0.10.0
libtpu: 0.0.40
codegen_flags: <defaults>
</compile_context>

<pallas_src>
import functools

import jax
import jax.numpy as jnp
from jax import lax
from jax.experimental import pallas as pl
from jax.experimental.pallas import tpu as pltpu


# ----------------------------------------------------------------------------
# Helpers
# ----------------------------------------------------------------------------
def _cdiv(a, b):
    return -(-a // b)


def _round_up(x, m):
    return _cdiv(x, m) * m


def _vmem_capacity_bytes():
    """Per-generation VMEM capacity (fallback: v7x's 64 MiB, the smallest)."""
    try:
        info = pltpu.get_tpu_info()
        cap = getattr(info, "vmem_capacity_bytes", None)
        if cap:
            return int(cap)
    except Exception:
        pass
    return 64 * 1024 * 1024


# ----------------------------------------------------------------------------
# Kernel 1: bidirectional GRU recurrence + masked mean over time.
#   grid = (direction, batch_tile, time_chunk); time is the innermost
#   "arbitrary" axis; h / acc are VMEM scratch carried across time chunks.
#   gi (= x @ W_ih + b_ih, gathered from a prepacked table) arrives as a
#   pipelined input chunk, so the serial loop only does the h recurrence.
#   PyTorch gate order (r, z, n):
#     r = sigmoid(gi_r + W_hr h + b_hr)
#     z = sigmoid(gi_z + W_hz h + b_hz)
#     n = tanh  (gi_n + r * (W_hn h + b_hn))
#     h' = (1 - z) * n + z * h
# ----------------------------------------------------------------------------
def gru_kernel(gi_ref, whh_ref, bhh_ref, out_ref, h_ref, acc_ref, *,
               hp, t_chunk, t_real, inv_t, unroll, mask_time):
    d = pl.program_id(0)          # direction: 0 = forward, 1 = backward
    t = pl.program_id(2)          # time-chunk index
    nt = pl.num_programs(2)
    Hp = hp
    Tc = t_chunk

    @pl.when(t == 0)
    def _init():
        h_ref[...] = jnp.zeros_like(h_ref)
        acc_ref[...] = jnp.zeros_like(acc_ref)

    whh = whh_ref[0]              # (Hp, 3Hp) bf16, loop-invariant
    bhh = bhh_ref[0]              # (1, 3Hp)  f32

    # First padded-time index covered by this chunk (needed for masking).
    chunk = (1 - d) * t + d * (nt - 1 - t)
    base = chunk * Tc

    def step(s, carry):
        h, acc = carry
        # Backward direction walks the chunk in reverse time order (the chunk
        # order itself is already reversed by the gi index_map).
        ts = jnp.where(d == 0, s, Tc - 1 - s)
        gi_t = gi_ref[ts].astype(jnp.float32)                 # (Bt, 3Hp)
        gh = jnp.dot(h.astype(jnp.bfloat16), whh,
                     preferred_element_type=jnp.float32) + bhh
        # Gate slices are 128-lane aligned (Hp is a multiple of 128).
        r = jax.nn.sigmoid(gi_t[:, :Hp] + gh[:, :Hp])
        z = jax.nn.sigmoid(gi_t[:, Hp:2 * Hp] + gh[:, Hp:2 * Hp])
        n = jnp.tanh(gi_t[:, 2 * Hp:] + r * gh[:, 2 * Hp:])
        h_new = (1.0 - z) * n + z * h
        if mask_time:
            # Padded timesteps (>= t_real) neither move h nor enter the mean.
            m = ((base + ts) < t_real).astype(jnp.float32)
            h_next = m * h_new + (1.0 - m) * h
            acc = acc + m * h_new
        else:
            h_next = h_new
            acc = acc + h_new
        return h_next, acc

    h, acc = lax.fori_loop(0, Tc, step, (h_ref[...], acc_ref[...]),
                           unroll=unroll)
    h_ref[...] = h
    acc_ref[...] = acc

    @pl.when(t == nt - 1)
    def _finish():
        out_ref[...] = (acc * inv_t).reshape(out_ref.shape)


def gru_bidir_mean(gi, whh, bhh, *, B_tile, T_chunk, t_real, vmem_limit):
    """gi: (T_pad, B_pad, 2*3Hp) bf16 time-major.  Returns (2, B_pad, Hp) f32."""
    T_pad, Bp, two_g = gi.shape
    G = two_g // 2
    Hp = whh.shape[1]
    nb = Bp // B_tile
    nt = T_pad // T_chunk

    if T_chunk % 8 == 0:
        unroll = 8
    elif T_chunk % 4 == 0:
        unroll = 4
    elif T_chunk % 2 == 0:
        unroll = 2
    else:
        unroll = 1

    kernel = functools.partial(
        gru_kernel, hp=Hp, t_chunk=T_chunk, t_real=t_real,
        inv_t=1.0 / t_real, unroll=unroll, mask_time=(T_pad != t_real))

    def gi_map(d, b, t):
        # forward: chunk t; backward: chunk nt-1-t (in-chunk order reversed
        # inside the kernel).  Direction d selects the lane-block of gi.
        return ((1 - d) * t + d * (nt - 1 - t), b, d)

    return pl.pallas_call(
        kernel,
        out_shape=jax.ShapeDtypeStruct((2, Bp, Hp), jnp.float32),
        grid_spec=pltpu.PrefetchScalarGridSpec(
            num_scalar_prefetch=0,
            grid=(2, nb, nt),
            in_specs=[
                pl.BlockSpec((T_chunk, B_tile, G), gi_map),
                pl.BlockSpec((1, Hp, G), lambda d, b, t: (d, 0, 0)),
                pl.BlockSpec((1, 1, G), lambda d, b, t: (d, 0, 0)),
            ],
            out_specs=pl.BlockSpec((1, B_tile, Hp), lambda d, b, t: (d, b, 0)),
            scratch_shapes=[
                pltpu.VMEM((B_tile, Hp), jnp.float32),   # h carry
                pltpu.VMEM((B_tile, Hp), jnp.float32),   # mean accumulator
            ],
        ),
        compiler_params=pltpu.CompilerParams(
            dimension_semantics=("parallel", "parallel", "arbitrary"),
            vmem_limit_bytes=vmem_limit,
        ),
    )(gi, whh, bhh)


# ----------------------------------------------------------------------------
# Kernel 2: classifier head (eval mode, BatchNorm folded into w1/b1).
#   Dropout(id) -> Linear -> BN(folded) -> LeakyReLU(0.01) -> Dropout(id) -> Linear
#   Consumes the GRU's (2, B, Hp) pooled output directly: w1 is split per
#   direction so no transpose / concat is needed between the two pallas_calls.
# ----------------------------------------------------------------------------
def head_kernel(p_ref, w1_ref, b1_ref, w2_ref, b2_ref, out_ref):
    h = (jnp.dot(p_ref[0], w1_ref[0], preferred_element_type=jnp.float32)
         + jnp.dot(p_ref[1], w1_ref[1], preferred_element_type=jnp.float32)
         + b1_ref[...])
    h = jnp.where(h > 0, h, 0.01 * h)          # LeakyReLU, PyTorch default slope
    out_ref[...] = (jnp.dot(h, w2_ref[...], preferred_element_type=jnp.float32)
                    + b2_ref[...])


def classifier_head(pooled, w1, b1, w2, b2, *, B_tile):
    _, Bp, Hp = pooled.shape
    Dp = w1.shape[-1]
    Cp = w2.shape[-1]
    return pl.pallas_call(
        head_kernel,
        out_shape=jax.ShapeDtypeStruct((Bp, Cp), jnp.float32),
        grid_spec=pltpu.PrefetchScalarGridSpec(
            num_scalar_prefetch=0,
            grid=(Bp // B_tile,),
            in_specs=[
                pl.BlockSpec((2, B_tile, Hp), lambda i: (0, i, 0)),
                pl.BlockSpec((2, Hp, Dp), lambda i: (0, 0, 0)),
                pl.BlockSpec((1, Dp), lambda i: (0, 0)),
                pl.BlockSpec((Dp, Cp), lambda i: (0, 0)),
                pl.BlockSpec((1, Cp), lambda i: (0, 0)),
            ],
            out_specs=pl.BlockSpec((B_tile, Cp), lambda i: (i, 0)),
        ),
        compiler_params=pltpu.CompilerParams(
            dimension_semantics=("parallel",)),
    )(pooled, w1, b1, w2, b2)


# ----------------------------------------------------------------------------
# End-to-end forward
# ----------------------------------------------------------------------------
@functools.partial(jax.jit, static_argnames=("num_class",))
def seq_classifier_forward(token_ids, prep, *, num_class):
    B, T = token_ids.shape
    Hp = prep["whh"].shape[1]
    G = prep["whh"].shape[2]                   # 3 * Hp

    # Batch tiling: as few tiles as possible, each a multiple of 8 rows,
    # capped at 128 (much fuller MXU M than the old 32-row cap).
    nb = _cdiv(B, 128)
    B_tile = _round_up(_cdiv(B, nb), 8)
    B_pad = nb * B_tile

    # Time chunking sized to the per-generation VMEM budget (v5e/v6e 128 MiB,
    # v7x 64 MiB); the gi chunk is the only large, double-buffered input.
    vmem_cap = _vmem_capacity_bytes()
    budget = int(vmem_cap * 0.70)
    fixed = 2 * (Hp * G * 2) + 4 * B_tile * Hp * 4 + (1 << 20)
    per_step = 2 * B_tile * G * 2              # 2 buffers, bf16 gi rows
    tc_cap = max(8, min(512, (budget - fixed) // per_step))
    nt = _cdiv(T, tc_cap)
    T_chunk = _cdiv(T, nt)
    T_pad = nt * T_chunk
    vmem_limit = min(int(vmem_cap * 0.85), 110 * 1024 * 1024)

    tok = token_ids
    if B_pad != B or T_pad != T:
        tok = jnp.pad(tok, ((0, B_pad - B), (0, T_pad - T)))

    # Fused embedding-lookup + input-projection + b_ih: one row gather from
    # the precomputed gi_table, already time-major for the kernel.
    # TODO(synk): for large vocab * 3H the gi_table does not fit; fall back to
    # streaming x and projecting in-kernel (or DMA-gather gi rows using
    # scalar-prefetched token ids) instead of materializing gi in HBM.
    gi = jnp.take(prep["gi_table"], tok.T, axis=0)   # (T_pad, B_pad, 2*G) bf16

    pooled = gru_bidir_mean(gi, prep["whh"], prep["bhh"],
                            B_tile=B_tile, T_chunk=T_chunk, t_real=T,
                            vmem_limit=vmem_limit)

    logits = classifier_head(pooled, prep["w1"], prep["b1"], prep["w2"],
                             prep["b2"], B_tile=B_tile)
    return logits[:B, :num_class]


# ----------------------------------------------------------------------------
# Parameters: PyTorch-shaped raw params  +  prep (pad / fold / fuse / cast)
# ----------------------------------------------------------------------------
def init_raw_params(key, vocab, emb_dim, hidden, num_class):
    ks = jax.random.split(key, 16)
    D = 2 * hidden

    def w(k, shape, scale=0.1):
        return (scale * jax.random.normal(k, shape)).astype(jnp.float32)

    return {
        "embeddings": w(ks[0], (vocab, emb_dim), 1.0),
        # GRU weights in PyTorch layout, gate order (r, z, n):
        "w_ih_f": w(ks[1], (3 * hidden, emb_dim)),
        "w_hh_f": w(ks[2], (3 * hidden, hidden)),
        "b_ih_f": w(ks[3], (3 * hidden,)),
        "b_hh_f": w(ks[4], (3 * hidden,)),
        "w_ih_b": w(ks[5], (3 * hidden, emb_dim)),
        "w_hh_b": w(ks[6], (3 * hidden, hidden)),
        "b_ih_b": w(ks[7], (3 * hidden,)),
        "b_hh_b": w(ks[8], (3 * hidden,)),
        # Classifier head (PyTorch Linear weights are (out, in)):
        "w1": w(ks[9], (D, D)),
        "b1": w(ks[10], (D,)),
        "gamma": 1.0 + w(ks[11], (D,)),
        "beta": w(ks[12], (D,)),
        "rmean": w(ks[13], (D,)),
        "rvar": 0.5 + jax.random.uniform(ks[14], (D,), dtype=jnp.float32),
        "w2": w(ks[15], (num_class, D)),
        "b2": jnp.zeros((num_class,), jnp.float32),
    }


def prepare_params(raw, hidden, num_class):
    """Pad to 128 lanes, fuse embed+W_ih+b_ih, fold BN, split w1 per direction."""
    H = hidden
    Hp = _round_up(H, 128)
    G = 3 * Hp
    D = 2 * H
    Dp = _round_up(D, 128)
    Cp = _round_up(num_class, 128)
    E = raw["embeddings"].shape[1]
    emb = raw["embeddings"].astype(jnp.float32)

    def pack_dir(w_ih, w_hh, b_ih, b_hh):
        # Each gate gets its own 128-lane-aligned block; padded hidden units
        # have zero weights/biases so they stay identically zero.
        wih = jnp.zeros((E, G), jnp.float32)
        whh = jnp.zeros((Hp, G), jnp.float32)
        bih = jnp.zeros((1, G), jnp.float32)
        bhh = jnp.zeros((1, G), jnp.float32)
        for g in range(3):                      # gate order (r, z, n)
            wih = wih.at[:, g * Hp:g * Hp + H].set(w_ih[g * H:(g + 1) * H, :].T)
            whh = whh.at[:H, g * Hp:g * Hp + H].set(w_hh[g * H:(g + 1) * H, :].T)
            bih = bih.at[0, g * Hp:g * Hp + H].set(b_ih[g * H:(g + 1) * H])
            bhh = bhh.at[0, g * Hp:g * Hp + H].set(b_hh[g * H:(g + 1) * H])
        # Fuse embedding lookup + input projection + b_ih into one table.
        gi_table = emb @ wih + bih              # (vocab, G) f32
        return gi_table, whh, bhh

    gi_f, whh_f, bhh_f = pack_dir(raw["w_ih_f"], raw["w_hh_f"],
                                  raw["b_ih_f"], raw["b_hh_f"])
    gi_b, whh_b, bhh_b = pack_dir(raw["w_ih_b"], raw["w_hh_b"],
                                  raw["b_ih_b"], raw["b_hh_b"])

    # Fold eval-mode BatchNorm1d into the first Linear.
    scale = raw["gamma"] * lax.rsqrt(raw["rvar"] + 1e-5)              # (D,)
    w1 = raw["w1"].T * scale[None, :]                                 # (D, D)
    b1 = (raw["b1"] - raw["rmean"]) * scale + raw["beta"]             # (D,)

    # Split w1 per direction so the head can read the GRU's (2, B, Hp) output
    # directly (forward rows 0:H, backward rows H:2H of the PyTorch concat).
    w1p = jnp.zeros((2, Hp, Dp), jnp.float32)
    w1p = w1p.at[0, :H, :D].set(w1[:H])
    w1p = w1p.at[1, :H, :D].set(w1[H:D])
    b1p = jnp.zeros((1, Dp), jnp.float32).at[0, :D].set(b1)
    w2p = jnp.zeros((Dp, Cp), jnp.float32).at[:D, :num_class].set(raw["w2"].T)
    b2p = jnp.zeros((1, Cp), jnp.float32).at[0, :num_class].set(raw["b2"])

    return {
        "gi_table": jnp.concatenate([gi_f, gi_b], axis=-1).astype(jnp.bfloat16),
        "whh": jnp.stack([whh_f, whh_b]).astype(jnp.bfloat16),   # (2, Hp, 3Hp)
        "bhh": jnp.stack([bhh_f, bhh_b]),                        # (2, 1, 3Hp) f32
        "w1": w1p,                                               # (2, Hp, Dp) f32
        "b1": b1p,                                               # (1, Dp) f32
        "w2": w2p,                                               # (Dp, Cp) f32
        "b2": b2p,                                               # (1, Cp) f32
    }


# ----------------------------------------------------------------------------
# Pure-JAX reference (f32, unpadded, PyTorch semantics) for verification
# ----------------------------------------------------------------------------
def reference_forward(token_ids, raw, hidden, num_class):
    H = hidden
    x = jnp.take(raw["embeddings"], token_ids, axis=0)           # (B, T, E)

    def gru_mean_dir(x_bte, w_ih, w_hh, b_ih, b_hh):
        B = x_bte.shape[0]

        def step(h, x_t):
            gi = x_t @ w_ih.T + b_ih
            gh = h @ w_hh.T + b_hh
            r = jax.nn.sigmoid(gi[:, :H] + gh[:, :H])
            z = jax.nn.sigmoid(gi[:, H:2 * H] + gh[:, H:2 * H])
            n = jnp.tanh(gi[:, 2 * H:] + r * gh[:, 2 * H:])
            h_new = (1.0 - z) * n + z * h
            return h_new, h_new

        h0 = jnp.zeros((B, H), jnp.float32)
        _, hs = lax.scan(step, h0, jnp.swapaxes(x_bte, 0, 1))
        return jnp.mean(hs, axis=0)

    fwd = gru_mean_dir(x, raw["w_ih_f"], raw["w_hh_f"], raw["b_ih_f"], raw["b_hh_f"])
    bwd = gru_mean_dir(x[:, ::-1], raw["w_ih_b"], raw["w_hh_b"],
                       raw["b_ih_b"], raw["b_hh_b"])
    feat = jnp.concatenate([fwd, bwd], axis=-1)
    h = feat @ raw["w1"].T + raw["b1"]
    h = (h - raw["rmean"]) / jnp.sqrt(raw["rvar"] + 1e-5) * raw["gamma"] + raw["beta"]
    h = jnp.where(h > 0, h, 0.01 * h)
    return h @ raw["w2"].T + raw["b2"]


if __name__ == "__main__":
    B, T = 2, 8            # batch, sequence length
    VOCAB, EMB = 32, 16    # embedding table
    HIDDEN = 32            # GRU hidden size (classifier dim = 64 bidirectional)
    NUM_CLASS = 4

    key = jax.random.PRNGKey(0)
    k_tok, k_par = jax.random.split(key)
    raw = init_raw_params(k_par, VOCAB, EMB, HIDDEN, NUM_CLASS)
    prep = prepare_params(raw, HIDDEN, NUM_CLASS)
    token_ids = jax.random.randint(k_tok, (B, T), 0, VOCAB, dtype=jnp.int32)

    logits = seq_classifier_forward(token_ids, prep, num_class=NUM_CLASS)
    logits = jax.block_until_ready(logits)
    assert logits.shape == (B, NUM_CLASS) and logits.dtype == jnp.float32

    ref = reference_forward(token_ids, raw, HIDDEN, NUM_CLASS)
    max_diff = float(jnp.max(jnp.abs(logits - ref)))
    assert jnp.allclose(logits, ref, atol=5e-2, rtol=5e-2), f"max diff {max_diff}"

    print("KERNEL_OK")
</pallas_src>

<mosaic_0001>
module attributes {stable_mosaic.version = 11 : i64} {
  func.func @head_kernel(%arg0: i32, %arg1: memref<2x8x128xf32, #tpu.memory_space<vmem>>, %arg2: memref<2x128x128xf32, #tpu.memory_space<vmem>>, %arg3: memref<1x128xf32, #tpu.memory_space<vmem>>, %arg4: memref<128x128xf32, #tpu.memory_space<vmem>>, %arg5: memref<1x128xf32, #tpu.memory_space<vmem>>, %arg6: memref<8x128xf32, #tpu.memory_space<vmem>>) attributes {dimension_semantics = [#tpu.dimension_semantics<parallel>], iteration_bounds = array<i64: 1>, scalar_prefetch = 0 : i64, scratch_operands = 0 : i64, tpu.core_type = #tpu.core_type<tc>, window_params = [{transform_indices = @transform_0, window_bounds = array<i64: 2, 8, 128>}, {pipeline_mode = #tpu.pipeline_mode<synchronous>, transform_indices = @transform_1, window_bounds = array<i64: 2, 128, 128>}, {pipeline_mode = #tpu.pipeline_mode<synchronous>, transform_indices = @transform_2, window_bounds = array<i64: 1, 128>}, {pipeline_mode = #tpu.pipeline_mode<synchronous>, transform_indices = @transform_3, window_bounds = array<i64: 128, 128>}, {pipeline_mode = #tpu.pipeline_mode<synchronous>, transform_indices = @transform_4, window_bounds = array<i64: 1, 128>}, {transform_indices = @transform_5, window_bounds = array<i64: 8, 128>}]} {
    %c0 = arith.constant 0 : index
    %c0_0 = arith.constant 0 : index
    %c0_1 = arith.constant 0 : index
    %0 = vector.load %arg1[%c0, %c0_0, %c0_1] : memref<2x8x128xf32, #tpu.memory_space<vmem>>, vector<1x8x128xf32>
    %1 = vector.shape_cast %0 : vector<1x8x128xf32> to vector<8x128xf32>
    %c0_2 = arith.constant 0 : index
    %c0_3 = arith.constant 0 : index
    %c0_4 = arith.constant 0 : index
    %2 = vector.load %arg2[%c0_2, %c0_3, %c0_4] : memref<2x128x128xf32, #tpu.memory_space<vmem>>, vector<1x128x128xf32>
    %3 = vector.shape_cast %2 : vector<1x128x128xf32> to vector<128x128xf32>
    %cst = arith.constant dense<0.000000e+00> : vector<8x128xf32>
    %4 = tpu.matmul %1, %3, %cst {dimension_numbers = #tpu.dot_dimension_numbers<[1], [0], [0], [1], [0, 0, 1, 1], [], []>} : vector<8x128xf32>, vector<128x128xf32>, vector<8x128xf32> -> vector<8x128xf32>
    %c1 = arith.constant 1 : index
    %c0_5 = arith.constant 0 : index
    %c0_6 = arith.constant 0 : index
    %5 = vector.load %arg1[%c1, %c0_5, %c0_6] : memref<2x8x128xf32, #tpu.memory_space<vmem>>, vector<1x8x128xf32>
    %6 = vector.shape_cast %5 : vector<1x8x128xf32> to vector<8x128xf32>
    %c1_7 = arith.constant 1 : index
    %c0_8 = arith.constant 0 : index
    %c0_9 = arith.constant 0 : index
    %7 = vector.load %arg2[%c1_7, %c0_8, %c0_9] : memref<2x128x128xf32, #tpu.memory_space<vmem>>, vector<1x128x128xf32>
    %8 = vector.shape_cast %7 : vector<1x128x128xf32> to vector<128x128xf32>
    %cst_10 = arith.constant dense<0.000000e+00> : vector<8x128xf32>
    %9 = tpu.matmul %6, %8, %cst_10 {dimension_numbers = #tpu.dot_dimension_numbers<[1], [0], [0], [1], [0, 0, 1, 1], [], []>} : vector<8x128xf32>, vector<128x128xf32>, vector<8x128xf32> -> vector<8x128xf32>
    %10 = arith.addf %4, %9 : vector<8x128xf32>
    %c0_11 = arith.constant 0 : index
    %c0_12 = arith.constant 0 : index
    %11 = vector.load %arg3[%c0_11, %c0_12] : memref<1x128xf32, #tpu.memory_space<vmem>>, vector<1x128xf32>
    %12 = vector.broadcast %11 : vector<1x128xf32> to vector<8x128xf32>
    %13 = arith.addf %10, %12 : vector<8x128xf32>
    %cst_13 = arith.constant 0.000000e+00 : f32
    %14 = vector.broadcast %cst_13 : f32 to vector<8x128xf32>
    %15 = arith.cmpf ogt, %13, %14 : vector<8x128xf32>
    %cst_14 = arith.constant 0.00999999977 : f32
    %16 = vector.broadcast %cst_14 : f32 to vector<8x128xf32>
    %17 = arith.mulf %16, %13 : vector<8x128xf32>
    %18 = arith.select %15, %13, %17 : vector<8x128xi1>, vector<8x128xf32>
    %c0_15 = arith.constant 0 : index
    %c0_16 = arith.constant 0 : index
    %19 = vector.load %arg4[%c0_15, %c0_16] : memref<128x128xf32, #tpu.memory_space<vmem>>, vector<128x128xf32>
    %cst_17 = arith.constant dense<0.000000e+00> : vector<8x128xf32>
    %20 = tpu.matmul %18, %19, %cst_17 {dimension_numbers = #tpu.dot_dimension_numbers<[1], [0], [0], [1], [0, 0, 1, 1], [], []>} : vector<8x128xf32>, vector<128x128xf32>, vector<8x128xf32> -> vector<8x128xf32>
    %c0_18 = arith.constant 0 : index
    %c0_19 = arith.constant 0 : index
    %21 = vector.load %arg5[%c0_18, %c0_19] : memref<1x128xf32, #tpu.memory_space<vmem>>, vector<1x128xf32>
    %22 = vector.broadcast %21 : vector<1x128xf32> to vector<8x128xf32>
    %23 = arith.addf %20, %22 : vector<8x128xf32>
    %c0_20 = arith.constant 0 : index
    %c0_21 = arith.constant 0 : index
    %24 = vector.load %arg6[%c0_20, %c0_21] : memref<8x128xf32, #tpu.memory_space<vmem>>, vector<8x128xf32>
    tpu.vector_store %arg6[%c0_20, %c0_21], %23 {strides = array<i32>} : memref<8x128xf32, #tpu.memory_space<vmem>>, vector<8x128xf32>,
    return
  }
  func.func @transform_0(%arg0: i32) -> (i32, i32, i32) {
    %c0_i32 = arith.constant 0 : i32
    %c0_i32_0 = arith.constant 0 : i32
    %c0_i32_1 = arith.constant 0 : i32
    return %c0_i32, %arg0, %c0_i32_0 : i32, i32, i32
  }
  func.func @transform_1(%arg0: i32) -> (i32, i32, i32) {
    %c0_i32 = arith.constant 0 : i32
    %c0_i32_0 = arith.constant 0 : i32
    %c0_i32_1 = arith.constant 0 : i32
    %c0_i32_2 = arith.constant 0 : i32
    return %c0_i32, %c0_i32_0, %c0_i32_1 : i32, i32, i32
  }
  func.func @transform_2(%arg0: i32) -> (i32, i32) {
    %c0_i32 = arith.constant 0 : i32
    %c0_i32_0 = arith.constant 0 : i32
    %c0_i32_1 = arith.constant 0 : i32
    return %c0_i32, %c0_i32_0 : i32, i32
  }
  func.func @transform_3(%arg0: i32) -> (i32, i32) {
    %c0_i32 = arith.constant 0 : i32
    %c0_i32_0 = arith.constant 0 : i32
    %c0_i32_1 = arith.constant 0 : i32
    return %c0_i32, %c0_i32_0 : i32, i32
  }
  func.func @transform_4(%arg0: i32) -> (i32, i32) {
    %c0_i32 = arith.constant 0 : i32
    %c0_i32_0 = arith.constant 0 : i32
    %c0_i32_1 = arith.constant 0 : i32
    return %c0_i32, %c0_i32_0 : i32, i32
  }
  func.func @transform_5(%arg0: i32) -> (i32, i32) {
    %c0_i32 = arith.constant 0 : i32
    %c0_i32_0 = arith.constant 0 : i32
    return %arg0, %c0_i32 : i32, i32
  }
}

module attributes {stable_mosaic.version = 11 : i64} {
  func.func @gru_kernel(%arg0: i32, %arg1: i32, %arg2: i32, %arg3: memref<8x8x384xbf16, #tpu.memory_space<vmem>>, %arg4: memref<1x128x384xbf16, #tpu.memory_space<vmem>>, %arg5: memref<1x1x384xf32, #tpu.memory_space<vmem>>, %arg6: memref<1x8x128xf32, #tpu.memory_space<vmem>>, %arg7: memref<8x128xf32, #tpu.memory_space<vmem>>, %arg8: memref<8x128xf32, #tpu.memory_space<vmem>>) attributes {dimension_semantics = [#tpu.dimension_semantics<parallel>, #tpu.dimension_semantics<parallel>, #tpu.dimension_semantics<arbitrary>], iteration_bounds = array<i64: 2, 1, 1>, scalar_prefetch = 0 : i64, scratch_operands = 2 : i64, tpu.core_type = #tpu.core_type<tc>, window_params = [{transform_indices = @transform_0, window_bounds = array<i64: 8, 8, 384>}, {transform_indices = @transform_1, window_bounds = array<i64: 1, 128, 384>}, {transform_indices = @transform_2, window_bounds = array<i64: 1, 1, 384>}, {transform_indices = @transform_3, window_bounds = array<i64: 1, 8, 128>}]} {
    %c0_i32 = arith.constant 0 : i32
    %0 = arith.cmpi eq, %arg2, %c0_i32 : i32
    %1 = arith.extui %0 : i1 to i32
    %c0_i32_0 = arith.constant 0 : i32
    %2 = arith.cmpi ne, %1, %c0_i32_0 : i32
    scf.if %2 {
      %cst_80 = arith.constant 0.000000e+00 : f32
      %318 = vector.broadcast %cst_80 : f32 to vector<8x128xf32>
      %c0_81 = arith.constant 0 : index
      %c0_82 = arith.constant 0 : index
      %319 = vector.load %arg7[%c0_81, %c0_82] : memref<8x128xf32, #tpu.memory_space<vmem>>, vector<8x128xf32>
      tpu.vector_store %arg7[%c0_81, %c0_82], %318 {strides = array<i32>} : memref<8x128xf32, #tpu.memory_space<vmem>>, vector<8x128xf32>,
      %cst_83 = arith.constant 0.000000e+00 : f32
      %320 = vector.broadcast %cst_83 : f32 to vector<8x128xf32>
      %c0_84 = arith.constant 0 : index
      %c0_85 = arith.constant 0 : index
      %321 = vector.load %arg8[%c0_84, %c0_85] : memref<8x128xf32, #tpu.memory_space<vmem>>, vector<8x128xf32>
      tpu.vector_store %arg8[%c0_84, %c0_85], %320 {strides = array<i32>} : memref<8x128xf32, #tpu.memory_space<vmem>>, vector<8x128xf32>,
    } else {
    }
    %c0 = arith.constant 0 : index
    %c0_1 = arith.constant 0 : index
    %c0_2 = arith.constant 0 : index
    %3 = vector.load %arg4[%c0, %c0_1, %c0_2] : memref<1x128x384xbf16, #tpu.memory_space<vmem>>, vector<1x128x384xbf16>
    %4 = vector.shape_cast %3 : vector<1x128x384xbf16> to vector<128x384xbf16>
    %c0_3 = arith.constant 0 : index
    %c0_4 = arith.constant 0 : index
    %c0_5 = arith.constant 0 : index
    %5 = vector.load %arg5[%c0_3, %c0_4, %c0_5] : memref<1x1x384xf32, #tpu.memory_space<vmem>>, vector<1x1x384xf32>
    %6 = vector.shape_cast %5 : vector<1x1x384xf32> to vector<1x384xf32>
    %c0_6 = arith.constant 0 : index
    %c0_7 = arith.constant 0 : index
    %7 = vector.load %arg7[%c0_6, %c0_7] : memref<8x128xf32, #tpu.memory_space<vmem>>, vector<8x128xf32>
    %c0_8 = arith.constant 0 : index
    %c0_9 = arith.constant 0 : index
    %8 = vector.load %arg8[%c0_8, %c0_9] : memref<8x128xf32, #tpu.memory_space<vmem>>, vector<8x128xf32>
    %c0_i32_10 = arith.constant 0 : i32
    %c0_i32_11 = arith.constant 0 : i32
    %9 = arith.cmpi eq, %arg0, %c0_i32_11 : i32
    %c7_i32 = arith.constant 7 : i32
    %10 = arith.subi %c7_i32, %c0_i32_10 : i32
    %11 = arith.select %9, %c0_i32_10, %10 : i32
    %12 = arith.index_cast %11 : i32 to index
    %c0_12 = arith.constant 0 : index
    %c0_13 = arith.constant 0 : index
    %13 = vector.load %arg3[%12, %c0_12, %c0_13] : memref<8x8x384xbf16, #tpu.memory_space<vmem>>, vector<1x8x384xbf16>
    %14 = vector.shape_cast %13 : vector<1x8x384xbf16> to vector<8x384xbf16>
    %15 = arith.extf %14 : vector<8x384xbf16> to vector<8x384xf32>
    %16 = arith.truncf %7 : vector<8x128xf32> to vector<8x128xbf16>
    %cst = arith.constant dense<0.000000e+00> : vector<8x384xf32>
    %17 = tpu.matmul %16, %4, %cst {dimension_numbers = #tpu.dot_dimension_numbers<[1], [0], [0], [1], [0, 0, 1, 1], [], []>} : vector<8x128xbf16>, vector<128x384xbf16>, vector<8x384xf32> -> vector<8x384xf32>
    %18 = vector.broadcast %6 : vector<1x384xf32> to vector<8x384xf32>
    %19 = arith.addf %17, %18 : vector<8x384xf32>
    %20 = vector.extract_strided_slice %15 {offsets = [0, 0], sizes = [8, 128], strides = [1, 1]} : vector<8x384xf32> to vector<8x128xf32>
    %21 = vector.extract_strided_slice %19 {offsets = [0, 0], sizes = [8, 128], strides = [1, 1]} : vector<8x384xf32> to vector<8x128xf32>
    %22 = arith.addf %20, %21 : vector<8x128xf32>
    %23 = arith.negf %22 : vector<8x128xf32>
    %24 = math.exp %23 : vector<8x128xf32>
    %cst_14 = arith.constant 1.000000e+00 : f32
    %25 = vector.broadcast %cst_14 : f32 to vector<8x128xf32>
    %26 = arith.addf %25, %24 : vector<8x128xf32>
    %27 = arith.divf %25, %26 : vector<8x128xf32>
    %28 = vector.extract_strided_slice %15 {offsets = [0, 128], sizes = [8, 128], strides = [1, 1]} : vector<8x384xf32> to vector<8x128xf32>
    %29 = vector.extract_strided_slice %19 {offsets = [0, 128], sizes = [8, 128], strides = [1, 1]} : vector<8x384xf32> to vector<8x128xf32>
    %30 = arith.addf %28, %29 : vector<8x128xf32>
    %31 = arith.negf %30 : vector<8x128xf32>
    %32 = math.exp %31 : vector<8x128xf32>
    %cst_15 = arith.constant 1.000000e+00 : f32
    %33 = vector.broadcast %cst_15 : f32 to vector<8x128xf32>
    %34 = arith.addf %33, %32 : vector<8x128xf32>
    %35 = arith.divf %33, %34 : vector<8x128xf32>
    %36 = vector.extract_strided_slice %15 {offsets = [0, 256], sizes = [8, 128], strides = [1, 1]} : vector<8x384xf32> to vector<8x128xf32>
    %37 = vector.extract_strided_slice %19 {offsets = [0, 256], sizes = [8, 128], strides = [1, 1]} : vector<8x384xf32> to vector<8x128xf32>
    %38 = arith.mulf %27, %37 : vector<8x128xf32>
    %39 = arith.addf %36, %38 : vector<8x128xf32>
    %40 = math.tanh %39 : vector<8x128xf32>
    %cst_16 = arith.constant 1.000000e+00 : f32
    %41 = vector.broadcast %cst_16 : f32 to vector<8x128xf32>
    %42 = arith.subf %41, %35 : vector<8x128xf32>
    %43 = arith.mulf %42, %40 : vector<8x128xf32>
    %44 = arith.mulf %35, %7 : vector<8x128xf32>
    %45 = arith.addf %43, %44 : vector<8x128xf32>
    %46 = arith.addf %8, %45 : vector<8x128xf32>
    %c1_i32 = arith.constant 1 : i32
    %c0_i32_17 = arith.constant 0 : i32
    %47 = arith.cmpi eq, %arg0, %c0_i32_17 : i32
    %c7_i32_18 = arith.constant 7 : i32
    %48 = arith.subi %c7_i32_18, %c1_i32 : i32
    %49 = arith.select %47, %c1_i32, %48 : i32
    %50 = arith.index_cast %49 : i32 to index
    %c0_19 = arith.constant 0 : index
    %c0_20 = arith.constant 0 : index
    %51 = vector.load %arg3[%50, %c0_19, %c0_20] : memref<8x8x384xbf16, #tpu.memory_space<vmem>>, vector<1x8x384xbf16>
    %52 = vector.shape_cast %51 : vector<1x8x384xbf16> to vector<8x384xbf16>
    %53 = arith.extf %52 : vector<8x384xbf16> to vector<8x384xf32>
    %54 = arith.truncf %45 : vector<8x128xf32> to vector<8x128xbf16>
    %cst_21 = arith.constant dense<0.000000e+00> : vector<8x384xf32>
    %55 = tpu.matmul %54, %4, %cst_21 {dimension_numbers = #tpu.dot_dimension_numbers<[1], [0], [0], [1], [0, 0, 1, 1], [], []>} : vector<8x128xbf16>, vector<128x384xbf16>, vector<8x384xf32> -> vector<8x384xf32>
    %56 = vector.broadcast %6 : vector<1x384xf32> to vector<8x384xf32>
    %57 = arith.addf %55, %56 : vector<8x384xf32>
    %58 = vector.extract_strided_slice %53 {offsets = [0, 0], sizes = [8, 128], strides = [1, 1]} : vector<8x384xf32> to vector<8x128xf32>
    %59 = vector.extract_strided_slice %57 {offsets = [0, 0], sizes = [8, 128], strides = [1, 1]} : vector<8x384xf32> to vector<8x128xf32>
    %60 = arith.addf %58, %59 : vector<8x128xf32>
    %61 = arith.negf %60 : vector<8x128xf32>
    %62 = math.exp %61 : vector<8x128xf32>
    %cst_22 = arith.constant 1.000000e+00 : f32
    %63 = vector.broadcast %cst_22 : f32 to vector<8x128xf32>
    %64 = arith.addf %63, %62 : vector<8x128xf32>
    %65 = arith.divf %63, %64 : vector<8x128xf32>
    %66 = vector.extract_strided_slice %53 {offsets = [0, 128], sizes = [8, 128], strides = [1, 1]} : vector<8x384xf32> to vector<8x128xf32>
    %67 = vector.extract_strided_slice %57 {offsets = [0, 128], sizes = [8, 128], strides = [1, 1]} : vector<8x384xf32> to vector<8x128xf32>
    %68 = arith.addf %66, %67 : vector<8x128xf32>
    %69 = arith.negf %68 : vector<8x128xf32>
    %70 = math.exp %69 : vector<8x128xf32>
    %cst_23 = arith.constant 1.000000e+00 : f32
    %71 = vector.broadcast %cst_23 : f32 to vector<8x128xf32>
    %72 = arith.addf %71, %70 : vector<8x128xf32>
    %73 = arith.divf %71, %72 : vector<8x128xf32>
    %74 = vector.extract_strided_slice %53 {offsets = [0, 256], sizes = [8, 128], strides = [1, 1]} : vector<8x384xf32> to vector<8x128xf32>
    %75 = vector.extract_strided_slice %57 {offsets = [0, 256], sizes = [8, 128], strides = [1, 1]} : vector<8x384xf32> to vector<8x128xf32>
    %76 = arith.mulf %65, %75 : vector<8x128xf32>
    %77 = arith.addf %74, %76 : vector<8x128xf32>
    %78 = math.tanh %77 : vector<8x128xf32>
    %cst_24 = arith.constant 1.000000e+00 : f32
    %79 = vector.broadcast %cst_24 : f32 to vector<8x128xf32>
    %80 = arith.subf %79, %73 : vector<8x128xf32>
    %81 = arith.mulf %80, %78 : vector<8x128xf32>
    %82 = arith.mulf %73, %45 : vector<8x128xf32>
    %83 = arith.addf %81, %82 : vector<8x128xf32>
    %84 = arith.addf %46, %83 : vector<8x128xf32>
    %c2_i32 = arith.constant 2 : i32
    %c0_i32_25 = arith.constant 0 : i32
    %85 = arith.cmpi eq, %arg0, %c0_i32_25 : i32
    %c7_i32_26 = arith.constant 7 : i32
    %86 = arith.subi %c7_i32_26, %c2_i32 : i32
    %87 = arith.select %85, %c2_i32, %86 : i32
    %88 = arith.index_cast %87 : i32 to index
    %c0_27 = arith.constant 0 : index
    %c0_28 = arith.constant 0 : index
    %89 = vector.load %arg3[%88, %c0_27, %c0_28] : memref<8x8x384xbf16, #tpu.memory_space<vmem>>, vector<1x8x384xbf16>
    %90 = vector.shape_cast %89 : vector<1x8x384xbf16> to vector<8x384xbf16>
    %91 = arith.extf %90 : vector<8x384xbf16> to vector<8x384xf32>
    %92 = arith.truncf %83 : vector<8x128xf32> to vector<8x128xbf16>
    %cst_29 = arith.constant dense<0.000000e+00> : vector<8x384xf32>
    %93 = tpu.matmul %92, %4, %cst_29 {dimension_numbers = #tpu.dot_dimension_numbers<[1], [0], [0], [1], [0, 0, 1, 1], [], []>} : vector<8x128xbf16>, vector<128x384xbf16>, vector<8x384xf32> -> vector<8x384xf32>
    %94 = vector.broadcast %6 : vector<1x384xf32> to vector<8x384xf32>
    %95 = arith.addf %93, %94 : vector<8x384xf32>
    %96 = vector.extract_strided_slice %91 {offsets = [0, 0], sizes = [8, 128], strides = [1, 1]} : vector<8x384xf32> to vector<8x128xf32>
    %97 = vector.extract_strided_slice %95 {offsets = [0, 0], sizes = [8, 128], strides = [1, 1]} : vector<8x384xf32> to vector<8x128xf32>
    %98 = arith.addf %96, %97 : vector<8x128xf32>
    %99 = arith.negf %98 : vector<8x128xf32>
    %100 = math.exp %99 : vector<8x128xf32>
    %cst_30 = arith.constant 1.000000e+00 : f32
    %101 = vector.broadcast %cst_30 : f32 to vector<8x128xf32>
    %102 = arith.addf %101, %100 : vector<8x128xf32>
    %103 = arith.divf %101, %102 : vector<8x128xf32>
    %104 = vector.extract_strided_slice %91 {offsets = [0, 128], sizes = [8, 128], strides = [1, 1]} : vector<8x384xf32> to vector<8x128xf32>
    %105 = vector.extract_strided_slice %95 {offsets = [0, 128], sizes = [8, 128], strides = [1, 1]} : vector<8x384xf32> to vector<8x128xf32>
    %106 = arith.addf %104, %105 : vector<8x128xf32>
    %107 = arith.negf %106 : vector<8x128xf32>
    %108 = math.exp %107 : vector<8x128xf32>
    %cst_31 = arith.constant 1.000000e+00 : f32
    %109 = vector.broadcast %cst_31 : f32 to vector<8x128xf32>
    %110 = arith.addf %109, %108 : vector<8x128xf32>
    %111 = arith.divf %109, %110 : vector<8x128xf32>
    %112 = vector.extract_strided_slice %91 {offsets = [0, 256], sizes = [8, 128], strides = [1, 1]} : vector<8x384xf32> to vector<8x128xf32>
    %113 = vector.extract_strided_slice %95 {offsets = [0, 256], sizes = [8, 128], strides = [1, 1]} : vector<8x384xf32> to vector<8x128xf32>
    %114 = arith.mulf %103, %113 : vector<8x128xf32>
    %115 = arith.addf %112, %114 : vector<8x128xf32>
    %116 = math.tanh %115 : vector<8x128xf32>
    %cst_32 = arith.constant 1.000000e+00 : f32
    %117 = vector.broadcast %cst_32 : f32 to vector<8x128xf32>
    %118 = arith.subf %117, %111 : vector<8x128xf32>
    %119 = arith.mulf %118, %116 : vector<8x128xf32>
    %120 = arith.mulf %111, %83 : vector<8x128xf32>
    %121 = arith.addf %119, %120 : vector<8x128xf32>
    %122 = arith.addf %84, %121 : vector<8x128xf32>
    %c3_i32 = arith.constant 3 : i32
    %c0_i32_33 = arith.constant 0 : i32
    %123 = arith.cmpi eq, %arg0, %c0_i32_33 : i32
    %c7_i32_34 = arith.constant 7 : i32
    %124 = arith.subi %c7_i32_34, %c3_i32 : i32
    %125 = arith.select %123, %c3_i32, %124 : i32
    %126 = arith.index_cast %125 : i32 to index
    %c0_35 = arith.constant 0 : index
    %c0_36 = arith.constant 0 : index
    %127 = vector.load %arg3[%126, %c0_35, %c0_36] : memref<8x8x384xbf16, #tpu.memory_space<vmem>>, vector<1x8x384xbf16>
    %128 = vector.shape_cast %127 : vector<1x8x384xbf16> to vector<8x384xbf16>
    %129 = arith.extf %128 : vector<8x384xbf16> to vector<8x384xf32>
    %130 = arith.truncf %121 : vector<8x128xf32> to vector<8x128xbf16>
    %cst_37 = arith.constant dense<0.000000e+00> : vector<8x384xf32>
    %131 = tpu.matmul %130, %4, %cst_37 {dimension_numbers = #tpu.dot_dimension_numbers<[1], [0], [0], [1], [0, 0, 1, 1], [], []>} : vector<8x128xbf16>, vector<128x384xbf16>, vector<8x384xf32> -> vector<8x384xf32>
    %132 = vector.broadcast %6 : vector<1x384xf32> to vector<8x384xf32>
    %133 = arith.addf %131, %132 : vector<8x384xf32>
    %134 = vector.extract_strided_slice %129 {offsets = [0, 0], sizes = [8, 128], strides = [1, 1]} : vector<8x384xf32> to vector<8x128xf32>
    %135 = vector.extract_strided_slice %133 {offsets = [0, 0], sizes = [8, 128], strides = [1, 1]} : vector<8x384xf32> to vector<8x128xf32>
    %136 = arith.addf %134, %135 : vector<8x128xf32>
    %137 = arith.negf %136 : vector<8x128xf32>
    %138 = math.exp %137 : vector<8x128xf32>
    %cst_38 = arith.constant 1.000000e+00 : f32
    %139 = vector.broadcast %cst_38 : f32 to vector<8x128xf32>
    %140 = arith.addf %139, %138 : vector<8x128xf32>
    %141 = arith.divf %139, %140 : vector<8x128xf32>
    %142 = vector.extract_strided_slice %129 {offsets = [0, 128], sizes = [8, 128], strides = [1, 1]} : vector<8x384xf32> to vector<8x128xf32>
    %143 = vector.extract_strided_slice %133 {offsets = [0, 128], sizes = [8, 128], strides = [1, 1]} : vector<8x384xf32> to vector<8x128xf32>
    %144 = arith.addf %142, %143 : vector<8x128xf32>
    %145 = arith.negf %144 : vector<8x128xf32>
    %146 = math.exp %145 : vector<8x128xf32>
    %cst_39 = arith.constant 1.000000e+00 : f32
    %147 = vector.broadcast %cst_39 : f32 to vector<8x128xf32>
    %148 = arith.addf %147, %146 : vector<8x128xf32>
    %149 = arith.divf %147, %148 : vector<8x128xf32>
    %150 = vector.extract_strided_slice %129 {offsets = [0, 256], sizes = [8, 128], strides = [1, 1]} : vector<8x384xf32> to vector<8x128xf32>
    %151 = vector.extract_strided_slice %133 {offsets = [0, 256], sizes = [8, 128], strides = [1, 1]} : vector<8x384xf32> to vector<8x128xf32>
    %152 = arith.mulf %141, %151 : vector<8x128xf32>
    %153 = arith.addf %150, %152 : vector<8x128xf32>
    %154 = math.tanh %153 : vector<8x128xf32>
    %cst_40 = arith.constant 1.000000e+00 : f32
    %155 = vector.broadcast %cst_40 : f32 to vector<8x128xf32>
    %156 = arith.subf %155, %149 : vector<8x128xf32>
    %157 = arith.mulf %156, %154 : vector<8x128xf32>
    %158 = arith.mulf %149, %121 : vector<8x128xf32>
    %159 = arith.addf %157, %158 : vector<8x128xf32>
    %160 = arith.addf %122, %159 : vector<8x128xf32>
    %c4_i32 = arith.constant 4 : i32
    %c0_i32_41 = arith.constant 0 : i32
    %161 = arith.cmpi eq, %arg0, %c0_i32_41 : i32
    %c7_i32_42 = arith.constant 7 : i32
    %162 = arith.subi %c7_i32_42, %c4_i32 : i32
    %163 = arith.select %161, %c4_i32, %162 : i32
    %164 = arith.index_cast %163 : i32 to index
    %c0_43 = arith.constant 0 : index
    %c0_44 = arith.constant 0 : index
    %165 = vector.load %arg3[%164, %c0_43, %c0_44] : memref<8x8x384xbf16, #tpu.memory_space<vmem>>, vector<1x8x384xbf16>
    %166 = vector.shape_cast %165 : vector<1x8x384xbf16> to vector<8x384xbf16>
    %167 = arith.extf %166 : vector<8x384xbf16> to vector<8x384xf32>
    %168 = arith.truncf %159 : vector<8x128xf32> to vector<8x128xbf16>
    %cst_45 = arith.constant dense<0.000000e+00> : vector<8x384xf32>
    %169 = tpu.matmul %168, %4, %cst_45 {dimension_numbers = #tpu.dot_dimension_numbers<[1], [0], [0], [1], [0, 0, 1, 1], [], []>} : vector<8x128xbf16>, vector<128x384xbf16>, vector<8x384xf32> -> vector<8x384xf32>
    %170 = vector.broadcast %6 : vector<1x384xf32> to vector<8x384xf32>
    %171 = arith.addf %169, %170 : vector<8x384xf32>
    %172 = vector.extract_strided_slice %167 {offsets = [0, 0], sizes = [8, 128], strides = [1, 1]} : vector<8x384xf32> to vector<8x128xf32>
    %173 = vector.extract_strided_slice %171 {offsets = [0, 0], sizes = [8, 128], strides = [1, 1]} : vector<8x384xf32> to vector<8x128xf32>
    %174 = arith.addf %172, %173 : vector<8x128xf32>
    %175 = arith.negf %174 : vector<8x128xf32>
    %176 = math.exp %175 : vector<8x128xf32>
    %cst_46 = arith.constant 1.000000e+00 : f32
    %177 = vector.broadcast %cst_46 : f32 to vector<8x128xf32>
    %178 = arith.addf %177, %176 : vector<8x128xf32>
    %179 = arith.divf %177, %178 : vector<8x128xf32>
    %180 = vector.extract_strided_slice %167 {offsets = [0, 128], sizes = [8, 128], strides = [1, 1]} : vector<8x384xf32> to vector<8x128xf32>
    %181 = vector.extract_strided_slice %171 {offsets = [0, 128], sizes = [8, 128], strides = [1, 1]} : vector<8x384xf32> to vector<8x128xf32>
    %182 = arith.addf %180, %181 : vector<8x128xf32>
    %183 = arith.negf %182 : vector<8x128xf32>
    %184 = math.exp %183 : vector<8x128xf32>
    %cst_47 = arith.constant 1.000000e+00 : f32
    %185 = vector.broadcast %cst_47 : f32 to vector<8x128xf32>
    %186 = arith.addf %185, %184 : vector<8x128xf32>
    %187 = arith.divf %185, %186 : vector<8x128xf32>
    %188 = vector.extract_strided_slice %167 {offsets = [0, 256], sizes = [8, 128], strides = [1, 1]} : vector<8x384xf32> to vector<8x128xf32>
    %189 = vector.extract_strided_slice %171 {offsets = [0, 256], sizes = [8, 128], strides = [1, 1]} : vector<8x384xf32> to vector<8x128xf32>
    %190 = arith.mulf %179, %189 : vector<8x128xf32>
    %191 = arith.addf %188, %190 : vector<8x128xf32>
    %192 = math.tanh %191 : vector<8x128xf32>
    %cst_48 = arith.constant 1.000000e+00 : f32
    %193 = vector.broadcast %cst_48 : f32 to vector<8x128xf32>
    %194 = arith.subf %193, %187 : vector<8x128xf32>
    %195 = arith.mulf %194, %192 : vector<8x128xf32>
    %196 = arith.mulf %187, %159 : vector<8x128xf32>
    %197 = arith.addf %195, %196 : vector<8x128xf32>
    %198 = arith.addf %160, %197 : vector<8x128xf32>
    %c5_i32 = arith.constant 5 : i32
    %c0_i32_49 = arith.constant 0 : i32
    %199 = arith.cmpi eq, %arg0, %c0_i32_49 : i32
    %c7_i32_50 = arith.constant 7 : i32
    %200 = arith.subi %c7_i32_50, %c5_i32 : i32
    %201 = arith.select %199, %c5_i32, %200 : i32
    %202 = arith.index_cast %201 : i32 to index
    %c0_51 = arith.constant 0 : index
    %c0_52 = arith.constant 0 : index
    %203 = vector.load %arg3[%202, %c0_51, %c0_52] : memref<8x8x384xbf16, #tpu.memory_space<vmem>>, vector<1x8x384xbf16>
    %204 = vector.shape_cast %203 : vector<1x8x384xbf16> to vector<8x384xbf16>
    %205 = arith.extf %204 : vector<8x384xbf16> to vector<8x384xf32>
    %206 = arith.truncf %197 : vector<8x128xf32> to vector<8x128xbf16>
    %cst_53 = arith.constant dense<0.000000e+00> : vector<8x384xf32>
    %207 = tpu.matmul %206, %4, %cst_53 {dimension_numbers = #tpu.dot_dimension_numbers<[1], [0], [0], [1], [0, 0, 1, 1], [], []>} : vector<8x128xbf16>, vector<128x384xbf16>, vector<8x384xf32> -> vector<8x384xf32>
    %208 = vector.broadcast %6 : vector<1x384xf32> to vector<8x384xf32>
    %209 = arith.addf %207, %208 : vector<8x384xf32>
    %210 = vector.extract_strided_slice %205 {offsets = [0, 0], sizes = [8, 128], strides = [1, 1]} : vector<8x384xf32> to vector<8x128xf32>
    %211 = vector.extract_strided_slice %209 {offsets = [0, 0], sizes = [8, 128], strides = [1, 1]} : vector<8x384xf32> to vector<8x128xf32>
    %212 = arith.addf %210, %211 : vector<8x128xf32>
    %213 = arith.negf %212 : vector<8x128xf32>
    %214 = math.exp %213 : vector<8x128xf32>
    %cst_54 = arith.constant 1.000000e+00 : f32
    %215 = vector.broadcast %cst_54 : f32 to vector<8x128xf32>
    %216 = arith.addf %215, %214 : vector<8x128xf32>
    %217 = arith.divf %215, %216 : vector<8x128xf32>
    %218 = vector.extract_strided_slice %205 {offsets = [0, 128], sizes = [8, 128], strides = [1, 1]} : vector<8x384xf32> to vector<8x128xf32>
    %219 = vector.extract_strided_slice %209 {offsets = [0, 128], sizes = [8, 128], strides = [1, 1]} : vector<8x384xf32> to vector<8x128xf32>
    %220 = arith.addf %218, %219 : vector<8x128xf32>
    %221 = arith.negf %220 : vector<8x128xf32>
    %222 = math.exp %221 : vector<8x128xf32>
    %cst_55 = arith.constant 1.000000e+00 : f32
    %223 = vector.broadcast %cst_55 : f32 to vector<8x128xf32>
    %224 = arith.addf %223, %222 : vector<8x128xf32>
    %225 = arith.divf %223, %224 : vector<8x128xf32>
    %226 = vector.extract_strided_slice %205 {offsets = [0, 256], sizes = [8, 128], strides = [1, 1]} : vector<8x384xf32> to vector<8x128xf32>
    %227 = vector.extract_strided_slice %209 {offsets = [0, 256], sizes = [8, 128], strides = [1, 1]} : vector<8x384xf32> to vector<8x128xf32>
    %228 = arith.mulf %217, %227 : vector<8x128xf32>
    %229 = arith.addf %226, %228 : vector<8x128xf32>
    %230 = math.tanh %229 : vector<8x128xf32>
    %cst_56 = arith.constant 1.000000e+00 : f32
    %231 = vector.broadcast %cst_56 : f32 to vector<8x128xf32>
    %232 = arith.subf %231, %225 : vector<8x128xf32>
    %233 = arith.mulf %232, %230 : vector<8x128xf32>
    %234 = arith.mulf %225, %197 : vector<8x128xf32>
    %235 = arith.addf %233, %234 : vector<8x128xf32>
    %236 = arith.addf %198, %235 : vector<8x128xf32>
    %c6_i32 = arith.constant 6 : i32
    %c0_i32_57 = arith.constant 0 : i32
    %237 = arith.cmpi eq, %arg0, %c0_i32_57 : i32
    %c7_i32_58 = arith.constant 7 : i32
    %238 = arith.subi %c7_i32_58, %c6_i32 : i32
    %239 = arith.select %237, %c6_i32, %238 : i32
    %240 = arith.index_cast %239 : i32 to index
    %c0_59 = arith.constant 0 : index
    %c0_60 = arith.constant 0 : index
    %241 = vector.load %arg3[%240, %c0_59, %c0_60] : memref<8x8x384xbf16, #tpu.memory_space<vmem>>, vector<1x8x384xbf16>
    %242 = vector.shape_cast %241 : vector<1x8x384xbf16> to vector<8x384xbf16>
    %243 = arith.extf %242 : vector<8x384xbf16> to vector<8x384xf32>
    %244 = arith.truncf %235 : vector<8x128xf32> to vector<8x128xbf16>
    %cst_61 = arith.constant dense<0.000000e+00> : vector<8x384xf32>
    %245 = tpu.matmul %244, %4, %cst_61 {dimension_numbers = #tpu.dot_dimension_numbers<[1], [0], [0], [1], [0, 0, 1, 1], [], []>} : vector<8x128xbf16>, vector<128x384xbf16>, vector<8x384xf32> -> vector<8x384xf32>
    %246 = vector.broadcast %6 : vector<1x384xf32> to vector<8x384xf32>
    %247 = arith.addf %245, %246 : vector<8x384xf32>
    %248 = vector.extract_strided_slice %243 {offsets = [0, 0], sizes = [8, 128], strides = [1, 1]} : vector<8x384xf32> to vector<8x128xf32>
    %249 = vector.extract_strided_slice %247 {offsets = [0, 0], sizes = [8, 128], strides = [1, 1]} : vector<8x384xf32> to vector<8x128xf32>
    %250 = arith.addf %248, %249 : vector<8x128xf32>
    %251 = arith.negf %250 : vector<8x128xf32>
    %252 = math.exp %251 : vector<8x128xf32>
    %cst_62 = arith.constant 1.000000e+00 : f32
    %253 = vector.broadcast %cst_62 : f32 to vector<8x128xf32>
    %254 = arith.addf %253, %252 : vector<8x128xf32>
    %255 = arith.divf %253, %254 : vector<8x128xf32>
    %256 = vector.extract_strided_slice %243 {offsets = [0, 128], sizes = [8, 128], strides = [1, 1]} : vector<8x384xf32> to vector<8x128xf32>
    %257 = vector.extract_strided_slice %247 {offsets = [0, 128], sizes = [8, 128], strides = [1, 1]} : vector<8x384xf32> to vector<8x128xf32>
    %258 = arith.addf %256, %257 : vector<8x128xf32>
    %259 = arith.negf %258 : vector<8x128xf32>
    %260 = math.exp %259 : vector<8x128xf32>
    %cst_63 = arith.constant 1.000000e+00 : f32
    %261 = vector.broadcast %cst_63 : f32 to vector<8x128xf32>
    %262 = arith.addf %261, %260 : vector<8x128xf32>
    %263 = arith.divf %261, %262 : vector<8x128xf32>
    %264 = vector.extract_strided_slice %243 {offsets = [0, 256], sizes = [8, 128], strides = [1, 1]} : vector<8x384xf32> to vector<8x128xf32>
    %265 = vector.extract_strided_slice %247 {offsets = [0, 256], sizes = [8, 128], strides = [1, 1]} : vector<8x384xf32> to vector<8x128xf32>
    %266 = arith.mulf %255, %265 : vector<8x128xf32>
    %267 = arith.addf %264, %266 : vector<8x128xf32>
    %268 = math.tanh %267 : vector<8x128xf32>
    %cst_64 = arith.constant 1.000000e+00 : f32
    %269 = vector.broadcast %cst_64 : f32 to vector<8x128xf32>
    %270 = arith.subf %269, %263 : vector<8x128xf32>
    %271 = arith.mulf %270, %268 : vector<8x128xf32>
    %272 = arith.mulf %263, %235 : vector<8x128xf32>
    %273 = arith.addf %271, %272 : vector<8x128xf32>
    %274 = arith.addf %236, %273 : vector<8x128xf32>
    %c7_i32_65 = arith.constant 7 : i32
    %c0_i32_66 = arith.constant 0 : i32
    %275 = arith.cmpi eq, %arg0, %c0_i32_66 : i32
    %c7_i32_67 = arith.constant 7 : i32
    %276 = arith.subi %c7_i32_67, %c7_i32_65 : i32
    %277 = arith.select %275, %c7_i32_65, %276 : i32
    %278 = arith.index_cast %277 : i32 to index
    %c0_68 = arith.constant 0 : index
    %c0_69 = arith.constant 0 : index
    %279 = vector.load %arg3[%278, %c0_68, %c0_69] : memref<8x8x384xbf16, #tpu.memory_space<vmem>>, vector<1x8x384xbf16>
    %280 = vector.shape_cast %279 : vector<1x8x384xbf16> to vector<8x384xbf16>
    %281 = arith.extf %280 : vector<8x384xbf16> to vector<8x384xf32>
    %282 = arith.truncf %273 : vector<8x128xf32> to vector<8x128xbf16>
    %cst_70 = arith.constant dense<0.000000e+00> : vector<8x384xf32>
    %283 = tpu.matmul %282, %4, %cst_70 {dimension_numbers = #tpu.dot_dimension_numbers<[1], [0], [0], [1], [0, 0, 1, 1], [], []>} : vector<8x128xbf16>, vector<128x384xbf16>, vector<8x384xf32> -> vector<8x384xf32>
    %284 = vector.broadcast %6 : vector<1x384xf32> to vector<8x384xf32>
    %285 = arith.addf %283, %284 : vector<8x384xf32>
    %286 = vector.extract_strided_slice %281 {offsets = [0, 0], sizes = [8, 128], strides = [1, 1]} : vector<8x384xf32> to vector<8x128xf32>
    %287 = vector.extract_strided_slice %285 {offsets = [0, 0], sizes = [8, 128], strides = [1, 1]} : vector<8x384xf32> to vector<8x128xf32>
    %288 = arith.addf %286, %287 : vector<8x128xf32>
    %289 = arith.negf %288 : vector<8x128xf32>
    %290 = math.exp %289 : vector<8x128xf32>
    %cst_71 = arith.constant 1.000000e+00 : f32
    %291 = vector.broadcast %cst_71 : f32 to vector<8x128xf32>
    %292 = arith.addf %291, %290 : vector<8x128xf32>
    %293 = arith.divf %291, %292 : vector<8x128xf32>
    %294 = vector.extract_strided_slice %281 {offsets = [0, 128], sizes = [8, 128], strides = [1, 1]} : vector<8x384xf32> to vector<8x128xf32>
    %295 = vector.extract_strided_slice %285 {offsets = [0, 128], sizes = [8, 128], strides = [1, 1]} : vector<8x384xf32> to vector<8x128xf32>
    %296 = arith.addf %294, %295 : vector<8x128xf32>
    %297 = arith.negf %296 : vector<8x128xf32>
    %298 = math.exp %297 : vector<8x128xf32>
    %cst_72 = arith.constant 1.000000e+00 : f32
    %299 = vector.broadcast %cst_72 : f32 to vector<8x128xf32>
    %300 = arith.addf %299, %298 : vector<8x128xf32>
    %301 = arith.divf %299, %300 : vector<8x128xf32>
    %302 = vector.extract_strided_slice %281 {offsets = [0, 256], sizes = [8, 128], strides = [1, 1]} : vector<8x384xf32> to vector<8x128xf32>
    %303 = vector.extract_strided_slice %285 {offsets = [0, 256], sizes = [8, 128], strides = [1, 1]} : vector<8x384xf32> to vector<8x128xf32>
    %304 = arith.mulf %293, %303 : vector<8x128xf32>
    %305 = arith.addf %302, %304 : vector<8x128xf32>
    %306 = math.tanh %305 : vector<8x128xf32>
    %cst_73 = arith.constant 1.000000e+00 : f32
    %307 = vector.broadcast %cst_73 : f32 to vector<8x128xf32>
    %308 = arith.subf %307, %301 : vector<8x128xf32>
    %309 = arith.mulf %308, %306 : vector<8x128xf32>
    %310 = arith.mulf %301, %273 : vector<8x128xf32>
    %311 = arith.addf %309, %310 : vector<8x128xf32>
    %312 = arith.addf %274, %311 : vector<8x128xf32>
    %c8_i32 = arith.constant 8 : i32
    %c0_74 = arith.constant 0 : index
    %c0_75 = arith.constant 0 : index
    %313 = vector.load %arg7[%c0_74, %c0_75] : memref<8x128xf32, #tpu.memory_space<vmem>>, vector<8x128xf32>
    tpu.vector_store %arg7[%c0_74, %c0_75], %311 {strides = array<i32>} : memref<8x128xf32, #tpu.memory_space<vmem>>, vector<8x128xf32>,
    %c0_76 = arith.constant 0 : index
    %c0_77 = arith.constant 0 : index
    %314 = vector.load %arg8[%c0_76, %c0_77] : memref<8x128xf32, #tpu.memory_space<vmem>>, vector<8x128xf32>
    tpu.vector_store %arg8[%c0_76, %c0_77], %312 {strides = array<i32>} : memref<8x128xf32, #tpu.memory_space<vmem>>, vector<8x128xf32>,
    %c0_i32_78 = arith.constant 0 : i32
    %315 = arith.cmpi eq, %arg2, %c0_i32_78 : i32
    %316 = arith.extui %315 : i1 to i32
    %c0_i32_79 = arith.constant 0 : i32
    %317 = arith.cmpi ne, %316, %c0_i32_79 : i32
    scf.if %317 {
      %cst_80 = arith.constant 1.250000e-01 : f32
      %318 = vector.broadcast %cst_80 : f32 to vector<8x128xf32>
      %319 = arith.mulf %312, %318 : vector<8x128xf32>
      %320 = vector.shape_cast %319 : vector<8x128xf32> to vector<1x8x128xf32>
      %c0_81 = arith.constant 0 : index
      %c0_82 = arith.constant 0 : index
      %c0_83 = arith.constant 0 : index
      %321 = vector.load %arg6[%c0_81, %c0_82, %c0_83] : memref<1x8x128xf32, #tpu.memory_space<vmem>>, vector<1x8x128xf32>
      tpu.vector_store %arg6[%c0_81, %c0_82, %c0_83], %320 {strides = array<i32>} : memref<1x8x128xf32, #tpu.memory_space<vmem>>, vector<1x8x128xf32>,
    } else {
    }
    return
  }
  func.func @transform_0(%arg0: i32, %arg1: i32, %arg2: i32) -> (i32, i32, i32) {
    %c1_i32 = arith.constant 1 : i32
    %0 = arith.subi %c1_i32, %arg0 : i32
    %1 = arith.muli %0, %arg2 : i32
    %c0_i32 = arith.constant 0 : i32
    %2 = arith.subi %c0_i32, %arg2 : i32
    %3 = arith.muli %arg0, %2 : i32
    %4 = arith.addi %1, %3 : i32
    %c0_i32_0 = arith.constant 0 : i32
    return %4, %arg1, %arg0 : i32, i32, i32
  }
  func.func @transform_1(%arg0: i32, %arg1: i32, %arg2: i32) -> (i32, i32, i32) {
    %c0_i32 = arith.constant 0 : i32
    %c0_i32_0 = arith.constant 0 : i32
    %c0_i32_1 = arith.constant 0 : i32
    return %arg0, %c0_i32, %c0_i32_0 : i32, i32, i32
  }
  func.func @transform_2(%arg0: i32, %arg1: i32, %arg2: i32) -> (i32, i32, i32) {
    %c0_i32 = arith.constant 0 : i32
    %c0_i32_0 = arith.constant 0 : i32
    %c0_i32_1 = arith.constant 0 : i32
    return %arg0, %c0_i32, %c0_i32_0 : i32, i32, i32
  }
  func.func @transform_3(%arg0: i32, %arg1: i32, %arg2: i32) -> (i32, i32, i32) {
    %c0_i32 = arith.constant 0 : i32
    %c0_i32_0 = arith.constant 0 : i32
    return %arg0, %arg1, %c0_i32 : i32, i32, i32
  }
}

</mosaic_0001>

<bundles_post_ra>
// kernel: seq_classifier_forward.3
= control target key start
LH: loop header
LB: loop body
LE: loop exit
PB: predicated region body
PF: predicated region fallthrough
CT: control target
= control target key end

     0   :  { %v555_v0 = vmov 0.0|0.0   ;;  %vm556_vm0 = vmmov 0   ;;  %v557_v8 = vmov 0.0   ;;  %s777_s1 = inlined_call_operand.vmem [shape: f32[2,128,128], index: 1, kind: input, shape index: {}]   ;;  %s778_s3 = inlined_call_operand.vmem [shape: f32[128,128], index: 3, kind: input, shape index: {}]   ;;  %s779_s0 = inlined_call_operand.vmem [shape: f32[2,8,128], index: 0, kind: input, shape index: {}]   ;;  %s780_s2 = inlined_call_operand.vmem [shape: f32[1,128], index: 2, kind: input, shape index: {}]   ;;  %s781_s4 = inlined_call_operand.vmem [shape: f32[1,128], index: 4, kind: input, shape index: {}]   ;;  %s782_s5 = inlined_call_operand.vmem [shape: f32[8,128], index: 5, kind: output, shape index: {}]  }
   0x1   :  { %480 = vmatprep.subr.bf16.mxu0 %v555_v0  ;;  %504 = vmatprep.subr.bf16.mxu1 %v555_v0  ;;  %v306_v1 = vld [vmem:[%s777_s1 + $0x80] sm:$0xff]  ;;  %v307_v2 = vld [vmem:[%s777_s1 + $0x88] sm:$0xff]  ;;  %v308_v6 = vld [vmem:[%s777_s1 + $0x90] sm:$0xff] }
   0x2   :  { %v21_v3 = vld [vmem:[%s777_s1] sm:$0xff]  ;;  %v481_v4 = vpack.c.bf16 %v307_v2, %v306_v1  ;;  %v22_v5 = vld [vmem:[%s777_s1 + $0x8] sm:$0xff]  ;;  %v309_v7 = vld [vmem:[%s777_s1 + $0x98] sm:$0xff]  ;;  %407 = vmatprep.mubr.msk.f32.mxu0 %vm556_vm0, %v557_v8  ;;  %442 = vmatprep.mubr.msk.f32.mxu1 %vm556_vm0, %v557_v8 }
   0x3   :  { %v505_v9 = vpack.c.bf16 %v22_v5, %v21_v3  ;;  %v23_v10 = vld [vmem:[%s777_s1 + $0x10] sm:$0xff]  ;;  %v24_v11 = vld [vmem:[%s777_s1 + $0x18] sm:$0xff]  ;;  %v484_v12 = vpack.c.bf16 %v309_v7, %v308_v6  ;;  %v310_v14 = vld [vmem:[%s777_s1 + $0xa0] sm:$0xff] }
   0x4   :  { %482 = vmatpush3.bf16.msra.mxu0 %v481_v4  ;;  %v508_v13 = vpack.c.bf16 %v24_v11, %v23_v10  ;;  %v311_v15 = vld [vmem:[%s777_s1 + $0xa8] sm:$0xff]  ;;  %v25_v16 = vld [vmem:[%s777_s1 + $0x20] sm:$0xff]  ;;  %v312_v20 = vld [vmem:[%s777_s1 + $0xb0] sm:$0xff] }
   0x5   :  { %506 = vmatpush3.bf16.msra.mxu1 %v505_v9  ;;  %483 = vmatprep.subr.bf16.mxu0 %v555_v0  ;;  %v26_v17 = vld [vmem:[%s777_s1 + $0x28] sm:$0xff]  ;;  %v487_v18 = vpack.c.bf16 %v311_v15, %v310_v14  ;;  %v313_v21 = vld [vmem:[%s777_s1 + $0xb8] sm:$0xff]  ;;  %v27_v22 = vld [vmem:[%s777_s1 + $0x30] sm:$0xff] }
   0x6   :  { %507 = vmatprep.subr.bf16.mxu1 %v555_v0  ;;  %v511_v19 = vpack.c.bf16 %v26_v17, %v25_v16  ;;  %v28_v23 = vld [vmem:[%s777_s1 + $0x38] sm:$0xff]  ;;  %v490_v24 = vpack.c.bf16 %v313_v21, %v312_v20  ;;  %v314_v26 = vld [vmem:[%s777_s1 + $0xc0] sm:$0xff]  ;;  %v315_v27 = vld [vmem:[%s777_s1 + $0xc8] sm:$0xff] }
   0x7   :  { %v514_v25 = vpack.c.bf16 %v28_v23, %v27_v22  ;;  %v29_v28 = vld [vmem:[%s777_s1 + $0x40] sm:$0xff]  ;;  %v30_v29 = vld [vmem:[%s777_s1 + $0x48] sm:$0xff]  ;;  %v493_v30 = vpack.c.bf16 %v315_v27, %v314_v26  ;;  %v316_v32 = vld [vmem:[%s777_s1 + $0xd0] sm:$0xff] }
   0x8   :  { %485 = vmatpush3.bf16.msra.mxu0 %v484_v12  ;;  %v517_v31 = vpack.c.bf16 %v30_v29, %v29_v28  ;;  %v317_v33 = vld [vmem:[%s777_s1 + $0xd8] sm:$0xff]  ;;  %v31_v34 = vld [vmem:[%s777_s1 + $0x50] sm:$0xff]  ;;  %v318_v38 = vld [vmem:[%s777_s1 + $0xe0] sm:$0xff] }
   0x9   :  { %509 = vmatpush3.bf16.msra.mxu1 %v508_v13  ;;  %486 = vmatprep.subr.bf16.mxu0 %v555_v0  ;;  %v32_v35 = vld [vmem:[%s777_s1 + $0x58] sm:$0xff]  ;;  %v496_v36 = vpack.c.bf16 %v317_v33, %v316_v32  ;;  %v319_v39 = vld [vmem:[%s777_s1 + $0xe8] sm:$0xff]  ;;  %v33_v40 = vld [vmem:[%s777_s1 + $0x60] sm:$0xff] }
   0xa   :  { %510 = vmatprep.subr.bf16.mxu1 %v555_v0  ;;  %v520_v37 = vpack.c.bf16 %v32_v35, %v31_v34  ;;  %v34_v41 = vld [vmem:[%s777_s1 + $0x68] sm:$0xff]  ;;  %v499_v42 = vpack.c.bf16 %v319_v39, %v318_v38  ;;  %v320_v44 = vld [vmem:[%s777_s1 + $0xf0] sm:$0xff]  ;;  %v321_v45 = vld [vmem:[%s777_s1 + $0xf8] sm:$0xff] }
   0xb   :  { %v523_v43 = vpack.c.bf16 %v34_v41, %v33_v40  ;;  %v35_v46 = vld [vmem:[%s777_s1 + $0x70] sm:$0xff]  ;;  %v36_v47 = vld [vmem:[%s777_s1 + $0x78] sm:$0xff]  ;;  %v502_v48 = vpack.c.bf16 %v321_v45, %v320_v44  ;;  %v207_v50 = vld [vmem:[%s778_s3] sm:$0xff] }
   0xc   :  { %488 = vmatpush3.bf16.msra.mxu0 %v487_v18  ;;  %v526_v49 = vpack.c.bf16 %v36_v47, %v35_v46  ;;  %v208_v51 = vld [vmem:[%s778_s3 + $0x8] sm:$0xff]  ;;  %v20_v54 = vld [vmem:[%s779_s0] sm:$0xff]  ;;  %v209_v55 = vld [vmem:[%s778_s3 + $0x10] sm:$0xff] }
   0xd   :  { %512 = vmatpush3.bf16.msra.mxu1 %v511_v19  ;;  %489 = vmatprep.subr.bf16.mxu0 %v555_v0  ;;  %v305_v52 = vld [vmem:[%s779_s0 + $0x8] sm:$0xff]  ;;  %v529_v53 = vpack.c.bf16 %v208_v51, %v207_v50  ;;  %v210_v56 = vld [vmem:[%s778_s3 + $0x18] sm:$0xff]  ;;  %v211_v58 = vld [vmem:[%s778_s3 + $0x20] sm:$0xff] }
   0xe   :  { %513 = vmatprep.subr.bf16.mxu1 %v555_v0  ;;  %v532_v57 = vpack.c.bf16 %v210_v56, %v209_v55  ;;  %v212_v59 = vld [vmem:[%s778_s3 + $0x28] sm:$0xff]  ;;  %v213_v61 = vld [vmem:[%s778_s3 + $0x30] sm:$0xff]  ;;  %v214_v62 = vld [vmem:[%s778_s3 + $0x38] sm:$0xff] }
   0xf   :  { %v535_v60 = vpack.c.bf16 %v212_v59, %v211_v58  ;;  %v538_v63 = vpack.c.bf16 %v214_v62, %v213_v61  ;;  %v215_v1 = vld [vmem:[%s778_s3 + $0x40] sm:$0xff]  ;;  %v216_v2 = vld [vmem:[%s778_s3 + $0x48] sm:$0xff]  ;;  %v217_v4 = vld [vmem:[%s778_s3 + $0x50] sm:$0xff] }
  0x10   :  { %491 = vmatpush3.bf16.msra.mxu0 %v490_v24  ;;  %v541_v3 = vpack.c.bf16 %v216_v2, %v215_v1  ;;  %v218_v5 = vld [vmem:[%s778_s3 + $0x58] sm:$0xff]  ;;  %v219_v7 = vld [vmem:[%s778_s3 + $0x60] sm:$0xff]  ;;  %v221_v10 = vld [vmem:[%s778_s3 + $0x70] sm:$0xff] }
  0x11   :  { %515 = vmatpush3.bf16.msra.mxu1 %v514_v25  ;;  %492 = vmatprep.subr.bf16.mxu0 %v555_v0  ;;  %v544_v6 = vpack.c.bf16 %v218_v5, %v217_v4  ;;  %v222_v11 = vld [vmem:[%s778_s3 + $0x78] sm:$0xff]  ;;  %v322_v15 = vld [vmem:[%s780_s2] ss:$0 sm:$0xff] }
  0x12   :  { %516 = vmatprep.subr.bf16.mxu1 %v555_v0  ;;  %v550_v12 = vpack.c.bf16 %v222_v11, %v221_v10  ;;  %v323_v21 = vld [vmem:[%s781_s4] ss:$0 sm:$0xff] }
  0x14   :  { %494 = vmatpush3.bf16.msra.mxu0 %v493_v30 }
  0x15   :  { %518 = vmatpush3.bf16.msra.mxu1 %v517_v31  ;;  %495 = vmatprep.subr.bf16.mxu0 %v555_v0 }
  0x16   :  { %519 = vmatprep.subr.bf16.mxu1 %v555_v0 }
  0x18   :  { %497 = vmatpush3.bf16.msra.mxu0 %v496_v36 }
  0x19   :  { %521 = vmatpush3.bf16.msra.mxu1 %v520_v37  ;;  %498 = vmatprep.subr.bf16.mxu0 %v555_v0 }
  0x1a   :  { %522 = vmatprep.subr.bf16.mxu1 %v555_v0 }
  0x1c   :  { %500 = vmatpush3.bf16.msra.mxu0 %v499_v42 }
  0x1d   :  { %524 = vmatpush3.bf16.msra.mxu1 %v523_v43  ;;  %501 = vmatprep.subr.bf16.mxu0 %v555_v0 }
  0x1e   :  { %525 = vmatprep.subr.bf16.mxu1 %v555_v0 }
  0x20   :  { %503 = vmatpush3.bf16.msra.mxu0 %v502_v48 }
  0x21   :  { %527 = vmatpush3.bf16.msra.mxu1 %v526_v49  ;;  %528 = vmatprep.subr.bf16.mxu0 %v555_v0 }
  0x23   :  { %408 = vmatmul.mubr.f32.vlgmr.msra.gmra.mrb[0].mxu0 %v305_v52 }
  0x24   :  { %443 = vmatmul.mubr.f32.vlgmr.msra.gmra.mrb[0].mxu1 %v20_v54  ;;  %530 = vmatpush3.bf16.msra.mxu0 %v529_v53 }
  0x25   :  { %531 = vmatprep.subr.bf16.mxu0 %v555_v0  ;;  %477 = vmatprep.mubr.msk.f32.mxu0 %vm556_vm0, %v557_v8  ;;  %v220_v8 = vld [vmem:[%s778_s3 + $0x68] sm:$0xff] }
  0x26   :  { %v547_v9 = vpack.c.bf16 %v220_v8, %v219_v7 }
  0x28   :  { %533 = vmatpush3.bf16.msra.mxu0 %v532_v57 }
  0x29   :  { %534 = vmatprep.subr.bf16.mxu0 %v555_v0 }
  0x2c   :  { %536 = vmatpush3.bf16.msra.mxu0 %v535_v60 }
  0x2d   :  { %537 = vmatprep.subr.bf16.mxu0 %v555_v0 }
  0x30   :  { %539 = vmatpush3.bf16.msra.mxu0 %v538_v63 }
  0x31   :  { %540 = vmatprep.subr.bf16.mxu0 %v555_v0 }
  0x34   :  { %542 = vmatpush3.bf16.msra.mxu0 %v541_v3 }
  0x35   :  { %543 = vmatprep.subr.bf16.mxu0 %v555_v0 }
  0x38   :  { %545 = vmatpush3.bf16.msra.mxu0 %v544_v6 }
  0x39   :  { %546 = vmatprep.subr.bf16.mxu0 %v555_v0 }
  0x3c   :  { %548 = vmatpush3.bf16.msra.mxu0 %v547_v9 }
  0x3d   :  { %549 = vmatprep.subr.bf16.mxu0 %v555_v0 }
  0x40   :  { %551 = vmatpush3.bf16.msra.mxu0 %v550_v12 }
  0xf6   :  { %v122_v13 = vpop.f32.mrb[0].mxu0 }
  0xf7   :  { %v192_v14 = vpop.f32.mrb[0].mxu1  ;;  %v409_v16 = vpop.f32.mrb[1].mxu0 }
  0xf8   :  { %v193_v17 = vadd.f32 %v192_v14, %v122_v13  ;;  %v444_v18 = vpop.f32.mrb[1].mxu1 }
  0xfa   :  { %v203_v0 = vadd.f32 %v322_v15, %v193_v17 }
  0xfc   :  { %v205_v19 = vmul.f32 0.01, %v203_v0  ;;  %vm204_vm1 = vcmp.gt.f32.partialorder %v203_v0, 0.0 }
  0xfe   :  { %v206_v20 = vsel %vm204_vm1, %v203_v0, %v205_v19 }
  0xff   :  { %478 = vmatmul.mubr.f32.vlgmr.msra.gmra.mrb[2].mxu0 %v206_v20 }
 0x1d2   :  { %v296_v22 = vpop.f32.mrb[2].mxu0 }
 0x1d3   :  { %v297_v23 = vadd.f32 %v323_v21, %v296_v22  ;;  %v479_v24 = vpop.f32.mrb[3].mxu0 }
 0x1d5   :  { %300 = vst [vmem:[%s782_s5] sm:$0xff] %v297_v23 }

// kernel: seq_classifier_forward.2
= control target key start
LH: loop header
LB: loop body
LE: loop exit
PB: predicated region body
PF: predicated region fallthrough
CT: control target
= control target key end

     0   :  { %s2114_s12 = smov 0   ;;  %s2116_s13 = smov 0   ;;  %s2660_s0 = inlined_call_operand.vmem [shape: bf16[8,8,768], index: 0, kind: input, shape index: {}]   ;;  %s2661_s1 = inlined_call_operand.vmem [shape: bf16[2,128,384], index: 1, kind: input, shape index: {}]   ;;  %s2662_s2 = inlined_call_operand.vmem [shape: f32[2,1,384], index: 2, kind: input, shape index: {}]   ;;  %s2663_s3 = inlined_call_operand.vmem [shape: f32[2,8,128], index: 3, kind: output, shape index: {}]  }
   0x1   :  { %s2118_s14 = smov 0   ;;  %s2120_s15 = smov 0  }
   0x2   :  { %s2122_s16 = smov 0  }
   0x3 LB: > { %s32_s17 = sadd.s32 1, %s2084_s15  ;;  %p60_p1 = scmp.ne.s32.totalorder %s2076_s13, %s2072_s12  ;;  %s2088_s16 = sphi %s2122_s16, %s13_s16   ;;  %s2084_s15 = sphi %s2120_s15, %s2667_s15   ;;  %s2080_s14 = sphi %s2118_s14, %s2666_s14   ;;  %s2076_s13 = sphi %s2116_s13, %s2665_s13   ;;  %s2072_s12 = sphi %s2114_s12, %s2664_s12  }
   0x4   : > { %p34_p0 = scmp.ge.s32.totalorder %s32_s17, 2  ;;  %p61_p2 = scmp.eq.s32.totalorder %s2088_s16, 0 }
   0x5   : > { %s53_s19 = sadd.s32 1, %s2076_s13  ;;  %p1554_p5 = scmp.ge.s32.totalorder %s2088_s16, 2 }
   0x6   : > { %s2669_s17 = smov (%p34_p0, %s32_s17), 0  ;;  %p62_p3 = por %p61_p2, %p60_p1 }
   0x7   : > { %s49_s18 = ssub.s32 %s2084_s15, %s2669_s17  ;;  %166 = sbr.rel (%p1554_p5) target bundleno = 28 (0x1c), region = 16 }
   0x8   : > { %p51_p4 = scmp.eq.s32.totalorder %s49_s18, 0 }
   0xa   : > { %s2149_s20 = scalar_select %p51_p4, %s2076_s13, %s53_s19  }
   0xe   : > { %169 = sbr.rel (!%p62_p3) target bundleno = 28 (0x1c), region = 20  ;;  %s171_s21 = sand.u32 (%p62_p3), 1, %s2076_s13  }
   0xf   : > { %s1625_s22 = smul.u32 (%p62_p3), 12, %s2084_s15 }
  0x10   : > { %s1866_s23 = smul.u32 (%p62_p3), 96, %s171_s21 }
  0x11   : > { %s2157_s26 = scalar_lea.vmem (%p62_p3), %s2660_s0, %s1625_s22 }
  0x12   : > { %v201_v0 = vld [vmem:[%s2157_s26] sm:$0xff] (%p62_p3)  ;;  %v203_v1 = vld [vmem:[%s2157_s26 + $0x18] sm:$0xff] (%p62_p3)  ;;  %v205_v2 = vld [vmem:[%s2157_s26 + $0x30] sm:$0xff] (%p62_p3)  ;;  %s173_s27 = scalar_lea.vmem (%p62_p3), [#allocation4], %s1866_s23 }
  0x13   : > { %202 = vst [vmem:[%s173_s27] sm:$0xff] (%p62_p3), %v201_v0  ;;  %204 = vst [vmem:[%s173_s27 + $0xc] sm:$0xff] (%p62_p3), %v203_v1  ;;  %v207_v3 = vld [vmem:[%s2157_s26 + $0x48] sm:$0xff] (%p62_p3)  ;;  %v209_v4 = vld [vmem:[%s2157_s26 + $0x60] sm:$0xff] (%p62_p3) }
  0x14   : > { %206 = vst [vmem:[%s173_s27 + $0x18] sm:$0xff] (%p62_p3), %v205_v2  ;;  %v211_v5 = vld [vmem:[%s2157_s26 + $0x78] sm:$0xff] (%p62_p3)  ;;  %208 = vst [vmem:[%s173_s27 + $0x24] sm:$0xff] (%p62_p3), %v207_v3  ;;  %v213_v6 = vld [vmem:[%s2157_s26 + $0x90] sm:$0xff] (%p62_p3) }
  0x15   : > { %210 = vst [vmem:[%s173_s27 + $0x30] sm:$0xff] %v209_v4  ;;  %212 = vst [vmem:[%s173_s27 + $0x3c] sm:$0xff] %v211_v5  ;;  %v215_v7 = vld [vmem:[%s2157_s26 + $0xa8] sm:$0xff]  ;;  %v1558_v9 = vld [vmem:[%s2157_s26 + $0x20] sm:$0xf] }
  0x16   : > { %v1556_v8 = vld [vmem:[%s2157_s26 + $0x8] sm:$0xf]  ;;  %214 = vst [vmem:[%s173_s27 + $0x48] sm:$0xff] %v213_v6  ;;  %216 = vst [vmem:[%s173_s27 + $0x54] sm:$0xff] %v215_v7  ;;  %v1560_v10 = vld [vmem:[%s2157_s26 + $0x38] sm:$0xf] }
  0x17   : > { %1557 = vst [vmem:[%s173_s27 + $0x8] sm:$0xf] %v1556_v8  ;;  %v1562_v11 = vld [vmem:[%s2157_s26 + $0x50] sm:$0xf]  ;;  %1559 = vst [vmem:[%s173_s27 + $0x14] sm:$0xf] %v1558_v9 }
  0x18   : > { %1561 = vst [vmem:[%s173_s27 + $0x20] sm:$0xf] %v1560_v10  ;;  %1563 = vst [vmem:[%s173_s27 + $0x2c] sm:$0xf] %v1562_v11  ;;  %v1564_v12 = vld [vmem:[%s2157_s26 + $0x68] sm:$0xf] }
  0x19   : > { %v1566_v13 = vld [vmem:[%s2157_s26 + $0x80] sm:$0xf]  ;;  %v1568_v14 = vld [vmem:[%s2157_s26 + $0x98] sm:$0xf]  ;;  %1565 = vst [vmem:[%s173_s27 + $0x38] sm:$0xf] %v1564_v12 }
  0x1a   : > { %1567 = vst [vmem:[%s173_s27 + $0x44] sm:$0xf] %v1566_v13  ;;  %1569 = vst [vmem:[%s173_s27 + $0x50] sm:$0xf] %v1568_v14  ;;  %v1570_v15 = vld [vmem:[%s2157_s26 + $0xb0] sm:$0xf] }
  0x1b   : > { %1571 = vst [vmem:[%s173_s27 + $0x5c] sm:$0xf] %v1570_v15 }
  0x1c PF: > { %p1572_p6 = scmp.ge.s32.totalorder %s2088_s16, 1  ;;  %p259_p7 = scmp.lt.s32.totalorder %s2088_s16, 3 }
  0x1e   : > { %p260_p8 = pnand %p1572_p6, %p259_p7 }
  0x1f   : > { %p307_p9 = scmp.lt.s32.totalorder (!%p260_p8), %s2080_s14, 1  ;;  %v2090_v16 = vmov (!%p260_p8), 0.0   ;;  %v2091_v17 = vmov (!%p260_p8), 0   ;;  %vm2092_vm0 = vmmov (!%p260_p8), 0   ;;  %v2093_v41 = vmov (!%p260_p8), 0.0|0.0   ;;  %p365_p10 = scmp.eq.s32.totalorder (!%p260_p8), %s2080_s14, 0 }
  0x20   : > { %263 = sbr.rel (%p260_p8) target bundleno = 2184 (0x888), region = 54  ;;  %1706 = vmatprep.subr.bf16.mxu1 (!%p260_p8), %v2090_v16  ;;  %552 = vmatprep.mubr.bf16.mxu0 (!%p260_p8), %v2091_v17  ;;  %s266_s6 = sand.u32 (!%p260_p8), 1, %s2072_s12   ;;  %v377_v43 = vlaneseq (!%p260_p8) }
  0x21   : > { %1722 = vmatprep.mubr.msk.bf16.mxu1 (!%p260_p8), %vm2092_vm0, %v2090_v16  ;;  %s1867_s8 = smul.u32 (!%p260_p8), 96, %s266_s6 }
  0x22   : > { %v378_v44 = vshrl.u32 (!%p260_p8), %v377_v43, 7 }
  0x23   : > { %s2339_s21 = scalar_lea.vmem (!%p260_p8), [#allocation4], %s1867_s8 }
  0x24   : > { %v379_v45 = vsub.s32 (!%p260_p8), 0, %v378_v44  ;;  %v383_v47 = vsub.s32 (!%p260_p8), 1, %v378_v44  ;;  %v387_v5 = vsub.s32 (!%p260_p8), 2, %v378_v44 }
  0x27   : > { %s2181_s28 = scalar_select %p307_p9, %s2080_s14, 1 }
  0x28   : > { %s366_s7 = scalar_select %p365_p10, 0, 7 }
  0x29   : > { %s1868_s29 = smul.u32 192, %s2181_s28  ;;  %s1574_s14 = sshll.u32 %s2181_s28, 3 }
  0x2a   : > { %s1869_s9 = smul.u32 3, %s2181_s28 }
  0x2b   : > { %s2189_s5 = scalar_lea.vmem %s2661_s1, %s1868_s29  ;;  %s1626_s10 = smul.u32 12, %s366_s7 }
  0x2c   : > { %v2192_v18 = vld [vmem:[%s2189_s5 + $0x4] ss:$12 sps:$4 sm:$0xff]   ;;  %v2195_v19 = vld [vmem:[%s2189_s5] ss:$12 sps:$4 sm:$0xff]   ;;  %v2199_v20 = vld [vmem:[%s2189_s5 + $0x1c] ss:$12 sps:$4 sm:$0xff]   ;;  %s315_s19 = scalar_lea.vmem %s2662_s2, %s1869_s9 }
  0x2d   : > { %520 = vmatprep.subr.bf16.mxu0 %v2192_v18  ;;  %v2203_v21 = vld [vmem:[%s2189_s5 + $0x18] ss:$12 sps:$4 sm:$0xff]   ;;  %v2207_v22 = vld [vmem:[%s2189_s5 + $0x34] ss:$12 sps:$4 sm:$0xff]   ;;  %v2211_v23 = vld [vmem:[%s2189_s5 + $0x30] ss:$12 sps:$4 sm:$0xff]   ;;  %s2342_s22 = scalar_lea.vmem %s2339_s21, %s1626_s10 [#allocation4] }
  0x2e   : > { %521 = vmatpush1.bf16.msra.mxu0 %v2195_v19  ;;  %v2215_v24 = vld [vmem:[%s2189_s5 + $0x4c] ss:$12 sps:$4 sm:$0xff]   ;;  %v2218_v25 = vld [vmem:[%s2189_s5 + $0x8] ss:$12 sps:$4 sm:$0xff]   ;;  %v2225_v27 = vld [vmem:[%s2189_s5 + $0x64] ss:$12 sps:$4 sm:$0xff]  }
  0x2f   : > { %522 = vmatprep.subr.bf16.mxu0 %v2199_v20  ;;  %v2222_v26 = vld [vmem:[%s2189_s5 + $0x48] ss:$12 sps:$4 sm:$0xff]   ;;  %1707 = vmatpush3.bf16.msra.mxu1 %v2218_v25  ;;  %v2230_v28 = vld [vmem:[%s2189_s5 + $0x20] ss:$12 sps:$4 sm:$0xff]   ;;  %v2243_v31 = vld [vmem:[%s2189_s5 + $0x38] ss:$12 sps:$4 sm:$0xff]  }
  0x30   : > { %1708 = vmatprep.subr.bf16.mxu1 %v2090_v16  ;;  %v2234_v29 = vld [vmem:[%s2189_s5 + $0x60] ss:$12 sps:$4 sm:$0xff]   ;;  %v2238_v30 = vld [vmem:[%s2189_s5 + $0x7c] ss:$12 sps:$4 sm:$0xff]   ;;  %v2248_v32 = vld [vmem:[%s2189_s5 + $0x78] ss:$12 sps:$4 sm:$0xff]  }
  0x31   : > { %v2252_v33 = vld [vmem:[%s2189_s5 + $0x94] ss:$12 sps:$4 sm:$0xff]   ;;  %v2256_v34 = vld [vmem:[%s2189_s5 + $0x50] ss:$12 sps:$4 sm:$0xff]   ;;  %v2265_v36 = vld [vmem:[%s2189_s5 + $0xac] ss:$12 sps:$4 sm:$0xff]  }
  0x32   : > { %523 = vmatpush1.bf16.msra.mxu0 %v2203_v21  ;;  %v2261_v35 = vld [vmem:[%s2189_s5 + $0x90] ss:$12 sps:$4 sm:$0xff]   ;;  %v2269_v37 = vld [vmem:[%s2189_s5 + $0x68] ss:$12 sps:$4 sm:$0xff]   ;;  %v2279_v39 = vld [vmem:[%s2189_s5 + $0x80] ss:$12 sps:$4 sm:$0xff]  }
  0x33   : > { %524 = vmatprep.subr.bf16.mxu0 %v2207_v22  ;;  %1709 = vmatpush3.bf16.msra.mxu1 %v2230_v28  ;;  %v2274_v38 = vld [vmem:[%s2189_s5 + $0xa8] ss:$12 sps:$4 sm:$0xff]   ;;  %v2285_v40 = vld [vmem:[%s2189_s5 + $0x98] ss:$12 sps:$4 sm:$0xff]   ;;  %v2293_v42 = vld [vmem:[%s2189_s5 + $0xb0] ss:$12 sps:$4 sm:$0xff]  }
  0x34   : > { %1710 = vmatprep.subr.bf16.mxu1 %v2090_v16  ;;  %v362_v46 = vld [vmem:[%s315_s19] sm:$0x7]  ;;  %v371_v8 = vld [vmem:[%s2342_s22 + $0x8] sm:$0xf]  ;;  %s623_s12 = scalar_select %p365_p10, 1, 6 }
  0x35   : > { %v370_v48 = vld [vmem:[%s2342_s22] sm:$0xff]  ;;  %v2345_v49 = vrot.slane %v362_v46, %v379_v45  ;;  %v2347_v50 = vrot.slane %v362_v46, %v383_v47  ;;  %v2351_v6 = vrot.slane %v362_v46, %v387_v5  ;;  %v374_v11 = vunpack.c.l.bf16 %v371_v8  ;;  %s736_s25 = scalar_select %p365_p10, 2, 5 }
  0x36   : > { %525 = vmatpush1.bf16.msra.mxu0 %v2211_v23  ;;  %v372_v51 = vunpack.c.l.bf16 %v370_v48  ;;  %v373_v55 = vunpack.c.h.bf16 %v370_v48  ;;  %s1627_s23 = smul.u32 12, %s623_s12 }
  0x37   : > { %526 = vmatprep.subr.bf16.mxu0 %v2215_v24  ;;  %1711 = vmatpush3.bf16.msra.mxu1 %v2243_v31  ;;  %s1628_s26 = smul.u32 12, %s736_s25  ;;  %s322_s25 = scalar_lea.vmem %s2663_s3, %s1574_s14 }
  0x38   : > { %1712 = vmatprep.subr.bf16.mxu1 %v2090_v16  ;;  %s626_s24 = scalar_lea.vmem %s2339_s21, %s1627_s23 [#allocation4] }
  0x39   : > { %v627_v48 = vld [vmem:[%s626_s24] sm:$0xff]  ;;  %s739_s27 = scalar_lea.vmem %s2339_s21, %s1628_s26 [#allocation4] }
  0x3a   : > { %527 = vmatpush1.bf16.msra.mxu0 %v2222_v26  ;;  %s849_s29 = scalar_select %p365_p10, 3, 4 }
  0x3b   : > { %528 = vmatprep.subr.bf16.mxu0 %v2225_v27  ;;  %1713 = vmatpush3.bf16.msra.mxu1 %v2256_v34  ;;  %s962_s6 = scalar_select %p365_p10, 4, 3 }
  0x3c   : > { %1714 = vmatprep.subr.bf16.mxu1 %v2090_v16  ;;  %s1629_s30 = smul.u32 12, %s849_s29 }
  0x3d   : > { %s1630_s7 = smul.u32 12, %s962_s6 }
  0x3e   : > { %529 = vmatpush1.bf16.msra.mxu0 %v2234_v29  ;;  %s852_s4 = scalar_lea.vmem %s2339_s21, %s1629_s30 [#allocation4] }
  0x3f   : > { %530 = vmatprep.subr.bf16.mxu0 %v2238_v30  ;;  %1715 = vmatpush3.bf16.msra.mxu1 %v2269_v37  ;;  %s965_s8 = scalar_lea.vmem %s2339_s21, %s1630_s7 [#allocation4] }
  0x40   : > { %1716 = vmatprep.subr.bf16.mxu1 %v2090_v16  ;;  %s1075_s9 = scalar_select %p365_p10, 5, 2 }
  0x41   : > { %s1188_s18 = scalar_select %p365_p10, 6, 1 }
  0x42   : > { %531 = vmatpush1.bf16.msra.mxu0 %v2248_v32  ;;  %s1631_s10 = smul.u32 12, %s1075_s9 }
  0x43   : > { %532 = vmatprep.subr.bf16.mxu0 %v2252_v33  ;;  %1717 = vmatpush3.bf16.msra.mxu1 %v2279_v39  ;;  %s1632_s19 = smul.u32 12, %s1188_s18 }
  0x44   : > { %1718 = vmatprep.subr.bf16.mxu1 %v2090_v16  ;;  %s1078_s11 = scalar_lea.vmem %s2339_s21, %s1631_s10 [#allocation4] }
  0x45   : > { %s1191_s22 = scalar_lea.vmem %s2339_s21, %s1632_s19 [#allocation4] }
  0x46   : > { %533 = vmatpush1.bf16.msra.mxu0 %v2261_v35 }
  0x47   : > { %534 = vmatprep.subr.bf16.mxu0 %v2265_v36  ;;  %1719 = vmatpush3.bf16.msra.mxu1 %v2285_v40 }
  0x48   : > { %1720 = vmatprep.subr.bf16.mxu1 %v2090_v16 }
  0x4a   : > { %535 = vmatpush1.bf16.msra.mxu0 %v2274_v38 }
  0x4b   : > { %633 = vmatprep.subr.bf16.mxu0 %v2192_v18  ;;  %1721 = vmatpush3.bf16.msra.mxu1 %v2293_v42 }
  0x4c   : > { %1726 = vmatprep.subr.bf16.mxu1 %v2090_v16 }
  0x4d   : > { %553 = vmatmul.mubr.bf16.vlgmr.msra.gmra.mrb[0].mxu0 %v2093_v41 }
  0x4e   : > { %634 = vmatpush1.bf16.msra.mxu0 %v2195_v19  ;;  %665 = vmatprep.mubr.bf16.mxu0 %v2091_v17 }
  0x4f   : > { %635 = vmatprep.subr.bf16.mxu0 %v2199_v20  ;;  %1723 = vmatmul.mubr.bf16.vlgmr.msra.gmra.mrb[0].mxu1 %v2093_v41 }
  0x50   : > { %1727 = vmatpush3.bf16.msra.mxu1 %v2218_v25  ;;  %1742 = vmatprep.mubr.msk.bf16.mxu1 %vm2092_vm0, %v2090_v16 }
  0x51   : > { %1728 = vmatprep.subr.bf16.mxu1 %v2090_v16 }
  0x52   : > { %636 = vmatpush1.bf16.msra.mxu0 %v2203_v21 }
  0x53   : > { %637 = vmatprep.subr.bf16.mxu0 %v2207_v22 }
  0x54   : > { %1729 = vmatpush3.bf16.msra.mxu1 %v2230_v28 }
  0x55   : > { %1730 = vmatprep.subr.bf16.mxu1 %v2090_v16 }
  0x56   : > { %638 = vmatpush1.bf16.msra.mxu0 %v2211_v23 }
  0x57   : > { %639 = vmatprep.subr.bf16.mxu0 %v2215_v24 }
  0x58   : > { %1731 = vmatpush3.bf16.msra.mxu1 %v2243_v31 }
  0x59   : > { %1732 = vmatprep.subr.bf16.mxu1 %v2090_v16 }
  0x5a   : > { %640 = vmatpush1.bf16.msra.mxu0 %v2222_v26 }
  0x5b   : > { %641 = vmatprep.subr.bf16.mxu0 %v2225_v27 }
  0x5c   : > { %1733 = vmatpush3.bf16.msra.mxu1 %v2256_v34 }
  0x5d   : > { %1734 = vmatprep.subr.bf16.mxu1 %v2090_v16 }
  0x5e   : > { %642 = vmatpush1.bf16.msra.mxu0 %v2234_v29 }
  0x5f   : > { %643 = vmatprep.subr.bf16.mxu0 %v2238_v30 }
  0x60   : > { %1735 = vmatpush3.bf16.msra.mxu1 %v2269_v37 }
  0x61   : > { %1736 = vmatprep.subr.bf16.mxu1 %v2090_v16 }
  0x62   : > { %644 = vmatpush1.bf16.msra.mxu0 %v2248_v32 }
  0x63   : > { %645 = vmatprep.subr.bf16.mxu0 %v2252_v33 }
  0x64   : > { %1737 = vmatpush3.bf16.msra.mxu1 %v2279_v39 }
  0x65   : > { %1738 = vmatprep.subr.bf16.mxu1 %v2090_v16 }
  0x66   : > { %646 = vmatpush1.bf16.msra.mxu0 %v2261_v35 }
  0x67   : > { %647 = vmatprep.subr.bf16.mxu0 %v2265_v36 }
  0x68   : > { %1739 = vmatpush3.bf16.msra.mxu1 %v2285_v40 }
  0x69   : > { %1740 = vmatprep.subr.bf16.mxu1 %v2090_v16 }
  0x6a   : > { %648 = vmatpush1.bf16.msra.mxu0 %v2274_v38 }
  0x6b   : > { %746 = vmatprep.subr.bf16.mxu0 %v2192_v18 }
  0x6c   : > { %1741 = vmatpush3.bf16.msra.mxu1 %v2293_v42 }
  0x6d   : > { %1746 = vmatprep.subr.bf16.mxu1 %v2090_v16 }
 0x120   : > { %v554_v52 = vpop.f32.mrb[0].mxu0 }
 0x121   : > { %v555_v53 = vadd.f32 %v554_v52, %v2345_v49  ;;  %v556_v54 = vpop.f32.mrb[1].mxu0 }
 0x122   : > { %v557_v56 = vadd.f32 %v556_v54, %v2347_v50  ;;  %v558_v57 = vpop.f32.mrb[2].mxu0  ;;  %v595_v62 = vpop.f32.mrb[0].mxu1 }
 0x123   : > { %v601_v58 = vadd.f32 %v555_v53, %v372_v51  ;;  %v559_v59 = vpop.f32.mrb[3].mxu0  ;;  %v1724_v0 = vpop.f32.mrb[1].mxu1  ;;  %v596_v10 = vadd.f32 %v595_v62, %v2351_v6  ;;  %v629_v51 = vunpack.c.l.bf16 %v627_v48  ;;  %v630_v57 = vunpack.c.h.bf16 %v627_v48  ;;  %v740_v48 = vld [vmem:[%s739_s27] sm:$0xff] }
 0x124   : > { %v608_v61 = vadd.f32 %v557_v56, %v373_v55  ;;  %v598_v1 = vpop.f32.mrb[2].mxu1 }
 0x125   : > { %v1600_v60 = vmul.f32 -1.442695, %v601_v58  ;;  %v1725_v2 = vpop.f32.mrb[3].mxu1 }
 0x126   : > { %v1601_v63 = vmul.f32 -1.442695, %v608_v61 }
 0x127   : > { %1946 = vpow2.f32 %v1600_v60 }
 0x128   : > { %1948 = vpow2.f32 %v1601_v63 }
 0x131   : > { %v1947_v3 = vpop.eup %1946 }
 0x132   : > { %v605_v4 = vadd.f32 1.0, %v1947_v3  ;;  %v1949_v7 = vpop.eup %1948 }
 0x133   : > { %v612_v9 = vadd.f32 1.0, %v1949_v7  ;;  %v628_v7 = vld [vmem:[%s626_s24 + $0x8] sm:$0xf] }
 0x134   : > { %1950 = vrcp.f32 %v605_v4 }
 0x135   : > { %1952 = vrcp.f32 %v612_v9  ;;  %v631_v9 = vunpack.c.l.bf16 %v628_v7  ;;  %v741_v7 = vld [vmem:[%s739_s27 + $0x8] sm:$0xf] }
 0x13e   : > { %v1951_v12 = vpop.eup %1950 }
 0x13f   : > { %v615_v13 = vmul.f32 %v1951_v12, %v596_v10  ;;  %v1953_v15 = vpop.eup %1952 }
 0x140   : > { %v618_v41 = vsub.f32 1.0, %v1953_v15  ;;  %v620_v47 = vmul.f32 0.0, %v1953_v15 }
 0x141   : > { %v616_v14 = vadd.f32 %v615_v13, %v374_v11 }
 0x143   : > { %1954 = vtanh.f32 %v616_v14 }
 0x14d   : > { %v1955_v43 = vpop.eup %1954 }
 0x14e   : > { %v619_v45 = vmul.f32 %v1955_v43, %v618_v41 }
 0x150   : > { %v2355_v44 = vadd.f32 %v620_v47, %v619_v45 }
 0x152   : > { %v632_v46 = vpack.c.bf16 %v2355_v44, %v2355_v44 }
 0x154   : > { %666 = vmatmul.mubr.bf16.vlgmr.msra.gmra.mrb[4].mxu0 %v632_v46  ;;  %1743 = vmatmul.mubr.bf16.vlgmr.msra.gmra.mrb[4].mxu1 %v632_v46 }
 0x155   : > { %747 = vmatpush1.bf16.msra.mxu0 %v2195_v19  ;;  %1747 = vmatpush3.bf16.msra.mxu1 %v2218_v25 }
 0x156   : > { %748 = vmatprep.subr.bf16.mxu0 %v2199_v20  ;;  %1748 = vmatprep.subr.bf16.mxu1 %v2090_v16 }
 0x157   : > { %778 = vmatprep.mubr.bf16.mxu0 %v2091_v17  ;;  %1762 = vmatprep.mubr.msk.bf16.mxu1 %vm2092_vm0, %v2090_v16 }
 0x159   : > { %749 = vmatpush1.bf16.msra.mxu0 %v2203_v21  ;;  %1749 = vmatpush3.bf16.msra.mxu1 %v2230_v28 }
 0x15a   : > { %750 = vmatprep.subr.bf16.mxu0 %v2207_v22  ;;  %1750 = vmatprep.subr.bf16.mxu1 %v2090_v16 }
 0x15d   : > { %751 = vmatpush1.bf16.msra.mxu0 %v2211_v23  ;;  %1751 = vmatpush3.bf16.msra.mxu1 %v2243_v31 }
 0x15e   : > { %752 = vmatprep.subr.bf16.mxu0 %v2215_v24  ;;  %1752 = vmatprep.subr.bf16.mxu1 %v2090_v16 }
 0x161   : > { %753 = vmatpush1.bf16.msra.mxu0 %v2222_v26  ;;  %1753 = vmatpush3.bf16.msra.mxu1 %v2256_v34 }
 0x162   : > { %754 = vmatprep.subr.bf16.mxu0 %v2225_v27  ;;  %1754 = vmatprep.subr.bf16.mxu1 %v2090_v16 }
 0x165   : > { %755 = vmatpush1.bf16.msra.mxu0 %v2234_v29  ;;  %1755 = vmatpush3.bf16.msra.mxu1 %v2269_v37 }
 0x166   : > { %756 = vmatprep.subr.bf16.mxu0 %v2238_v30  ;;  %1756 = vmatprep.subr.bf16.mxu1 %v2090_v16 }
 0x169   : > { %757 = vmatpush1.bf16.msra.mxu0 %v2248_v32  ;;  %1757 = vmatpush3.bf16.msra.mxu1 %v2279_v39 }
 0x16a   : > { %758 = vmatprep.subr.bf16.mxu0 %v2252_v33  ;;  %1758 = vmatprep.subr.bf16.mxu1 %v2090_v16 }
 0x16d   : > { %759 = vmatpush1.bf16.msra.mxu0 %v2261_v35  ;;  %1759 = vmatpush3.bf16.msra.mxu1 %v2285_v40 }
 0x16e   : > { %760 = vmatprep.subr.bf16.mxu0 %v2265_v36  ;;  %1760 = vmatprep.subr.bf16.mxu1 %v2090_v16 }
 0x171   : > { %761 = vmatpush1.bf16.msra.mxu0 %v2274_v38  ;;  %1761 = vmatpush3.bf16.msra.mxu1 %v2293_v42 }
 0x172   : > { %859 = vmatprep.subr.bf16.mxu0 %v2192_v18  ;;  %1766 = vmatprep.subr.bf16.mxu1 %v2090_v16 }
 0x227   : > { %v667_v52 = vpop.f32.mrb[4].mxu0  ;;  %v708_v53 = vpop.f32.mrb[4].mxu1 }
 0x228   : > { %v668_v54 = vadd.f32 %v667_v52, %v2345_v49  ;;  %v669_v55 = vpop.f32.mrb[5].mxu0  ;;  %v1744_v56 = vpop.f32.mrb[5].mxu1  ;;  %v709_v10 = vadd.f32 %v708_v53, %v2351_v6 }
 0x229   : > { %v670_v58 = vadd.f32 %v669_v55, %v2347_v50  ;;  %v671_v59 = vpop.f32.mrb[6].mxu0  ;;  %v711_v60 = vpop.f32.mrb[6].mxu1 }
 0x22a   : > { %v714_v61 = vadd.f32 %v668_v54, %v629_v51  ;;  %v672_v62 = vpop.f32.mrb[7].mxu0  ;;  %v1745_v63 = vpop.f32.mrb[7].mxu1  ;;  %v742_v51 = vunpack.c.l.bf16 %v740_v48 }
 0x22b   : > { %v721_v1 = vadd.f32 %v670_v58, %v630_v57  ;;  %v743_v57 = vunpack.c.h.bf16 %v740_v48 }
 0x22c   : > { %v1603_v0 = vmul.f32 -1.442695, %v714_v61 }
 0x22d   : > { %v1604_v2 = vmul.f32 -1.442695, %v721_v1 }
 0x22e   : > { %1956 = vpow2.f32 %v1603_v0 }
 0x22f   : > { %1958 = vpow2.f32 %v1604_v2 }
 0x238   : > { %v1957_v3 = vpop.eup %1956 }
 0x239   : > { %v718_v4 = vadd.f32 1.0, %v1957_v3  ;;  %v1959_v5 = vpop.eup %1958 }
 0x23a   : > { %v725_v8 = vadd.f32 1.0, %v1959_v5 }
 0x23b   : > { %1960 = vrcp.f32 %v718_v4 }
 0x23c   : > { %1962 = vrcp.f32 %v725_v8 }
 0x245   : > { %v1961_v11 = vpop.eup %1960 }
 0x246   : > { %v728_v12 = vmul.f32 %v1961_v11, %v709_v10  ;;  %v1963_v14 = vpop.eup %1962 }
 0x247   : > { %v731_v15 = vsub.f32 1.0, %v1963_v14  ;;  %v733_v45 = vmul.f32 %v1963_v14, %v2355_v44 }
 0x248   : > { %v729_v13 = vadd.f32 %v728_v12, %v631_v9  ;;  %v744_v9 = vunpack.c.l.bf16 %v741_v7 }
 0x24a   : > { %1964 = vtanh.f32 %v729_v13 }
 0x254   : > { %v1965_v41 = vpop.eup %1964 }
 0x255   : > { %v732_v43 = vmul.f32 %v1965_v41, %v731_v15 }
 0x257   : > { %v2401_v47 = vadd.f32 %v733_v45, %v732_v43 }
 0x259   : > { %v745_v46 = vpack.c.bf16 %v2401_v47, %v2401_v47 }
 0x25b   : > { %779 = vmatmul.mubr.bf16.vlgmr.msra.gmra.mrb[8].mxu0 %v745_v46  ;;  %1763 = vmatmul.mubr.bf16.vlgmr.msra.gmra.mrb[8].mxu1 %v745_v46 }
 0x25c   : > { %860 = vmatpush1.bf16.msra.mxu0 %v2195_v19  ;;  %1767 = vmatpush3.bf16.msra.mxu1 %v2218_v25 }
 0x25d   : > { %861 = vmatprep.subr.bf16.mxu0 %v2199_v20  ;;  %1768 = vmatprep.subr.bf16.mxu1 %v2090_v16 }
 0x25e   : > { %891 = vmatprep.mubr.bf16.mxu0 %v2091_v17  ;;  %1782 = vmatprep.mubr.msk.bf16.mxu1 %vm2092_vm0, %v2090_v16 }
 0x260   : > { %862 = vmatpush1.bf16.msra.mxu0 %v2203_v21  ;;  %1769 = vmatpush3.bf16.msra.mxu1 %v2230_v28 }
 0x261   : > { %863 = vmatprep.subr.bf16.mxu0 %v2207_v22  ;;  %1770 = vmatprep.subr.bf16.mxu1 %v2090_v16 }
 0x264   : > { %864 = vmatpush1.bf16.msra.mxu0 %v2211_v23  ;;  %1771 = vmatpush3.bf16.msra.mxu1 %v2243_v31 }
 0x265   : > { %865 = vmatprep.subr.bf16.mxu0 %v2215_v24  ;;  %1772 = vmatprep.subr.bf16.mxu1 %v2090_v16 }
 0x268   : > { %866 = vmatpush1.bf16.msra.mxu0 %v2222_v26  ;;  %1773 = vmatpush3.bf16.msra.mxu1 %v2256_v34 }
 0x269   : > { %867 = vmatprep.subr.bf16.mxu0 %v2225_v27  ;;  %1774 = vmatprep.subr.bf16.mxu1 %v2090_v16 }
 0x26c   : > { %868 = vmatpush1.bf16.msra.mxu0 %v2234_v29  ;;  %1775 = vmatpush3.bf16.msra.mxu1 %v2269_v37 }
 0x26d   : > { %869 = vmatprep.subr.bf16.mxu0 %v2238_v30  ;;  %1776 = vmatprep.subr.bf16.mxu1 %v2090_v16 }
 0x270   : > { %870 = vmatpush1.bf16.msra.mxu0 %v2248_v32  ;;  %1777 = vmatpush3.bf16.msra.mxu1 %v2279_v39 }
 0x271   : > { %871 = vmatprep.subr.bf16.mxu0 %v2252_v33  ;;  %1778 = vmatprep.subr.bf16.mxu1 %v2090_v16 }
 0x274   : > { %872 = vmatpush1.bf16.msra.mxu0 %v2261_v35  ;;  %1779 = vmatpush3.bf16.msra.mxu1 %v2285_v40 }
 0x275   : > { %873 = vmatprep.subr.bf16.mxu0 %v2265_v36  ;;  %1780 = vmatprep.subr.bf16.mxu1 %v2090_v16 }
 0x278   : > { %874 = vmatpush1.bf16.msra.mxu0 %v2274_v38  ;;  %1781 = vmatpush3.bf16.msra.mxu1 %v2293_v42 }
 0x279   : > { %972 = vmatprep.subr.bf16.mxu0 %v2192_v18  ;;  %1786 = vmatprep.subr.bf16.mxu1 %v2090_v16 }
 0x32e   : > { %v780_v52 = vpop.f32.mrb[8].mxu0  ;;  %v821_v53 = vpop.f32.mrb[8].mxu1 }
 0x32f   : > { %v781_v54 = vadd.f32 %v780_v52, %v2345_v49  ;;  %v782_v55 = vpop.f32.mrb[9].mxu0  ;;  %v1764_v56 = vpop.f32.mrb[9].mxu1  ;;  %v822_v10 = vadd.f32 %v821_v53, %v2351_v6 }
 0x330   : > { %v783_v58 = vadd.f32 %v782_v55, %v2347_v50  ;;  %v784_v59 = vpop.f32.mrb[10].mxu0  ;;  %v824_v60 = vpop.f32.mrb[10].mxu1 }
 0x331   : > { %v827_v61 = vadd.f32 %v781_v54, %v742_v51  ;;  %v785_v62 = vpop.f32.mrb[11].mxu0  ;;  %v1765_v63 = vpop.f32.mrb[11].mxu1  ;;  %v853_v51 = vld [vmem:[%s852_s4] sm:$0xff] }
 0x332   : > { %v834_v1 = vadd.f32 %v783_v58, %v743_v57  ;;  %v855_v52 = vunpack.c.l.bf16 %v853_v51  ;;  %v856_v58 = vunpack.c.h.bf16 %v853_v51 }
 0x333   : > { %v1606_v0 = vmul.f32 -1.442695, %v827_v61 }
 0x334   : > { %v1607_v2 = vmul.f32 -1.442695, %v834_v1 }
 0x335   : > { %1966 = vpow2.f32 %v1606_v0 }
 0x336   : > { %1968 = vpow2.f32 %v1607_v2 }
 0x33f   : > { %v1967_v3 = vpop.eup %1966 }
 0x340   : > { %v831_v4 = vadd.f32 1.0, %v1967_v3  ;;  %v1969_v5 = vpop.eup %1968 }
 0x341   : > { %v838_v8 = vadd.f32 1.0, %v1969_v5 }
 0x342   : > { %1970 = vrcp.f32 %v831_v4 }
 0x343   : > { %1972 = vrcp.f32 %v838_v8  ;;  %v854_v8 = vld [vmem:[%s852_s4 + $0x8] sm:$0xf] }
 0x34c   : > { %v1971_v11 = vpop.eup %1970 }
 0x34d   : > { %v841_v12 = vmul.f32 %v1971_v11, %v822_v10  ;;  %v1973_v14 = vpop.eup %1972  ;;  %v857_v10 = vunpack.c.l.bf16 %v854_v8 }
 0x34e   : > { %v844_v15 = vsub.f32 1.0, %v1973_v14  ;;  %v846_v45 = vmul.f32 %v1973_v14, %v2401_v47 }
 0x34f   : > { %v842_v13 = vadd.f32 %v841_v12, %v744_v9 }
 0x351   : > { %1974 = vtanh.f32 %v842_v13 }
 0x35b   : > { %v1975_v41 = vpop.eup %1974 }
 0x35c   : > { %v845_v43 = vmul.f32 %v1975_v41, %v844_v15 }
 0x35e   : > { %v2447_v46 = vadd.f32 %v846_v45, %v845_v43 }
 0x360   : > { %v858_v48 = vpack.c.bf16 %v2447_v46, %v2447_v46 }
 0x362   : > { %892 = vmatmul.mubr.bf16.vlgmr.msra.gmra.mrb[12].mxu0 %v858_v48  ;;  %1783 = vmatmul.mubr.bf16.vlgmr.msra.gmra.mrb[12].mxu1 %v858_v48 }
 0x363   : > { %973 = vmatpush1.bf16.msra.mxu0 %v2195_v19  ;;  %1787 = vmatpush3.bf16.msra.mxu1 %v2218_v25 }
 0x364   : > { %974 = vmatprep.subr.bf16.mxu0 %v2199_v20  ;;  %1788 = vmatprep.subr.bf16.mxu1 %v2090_v16 }
 0x365   : > { %1004 = vmatprep.mubr.bf16.mxu0 %v2091_v17  ;;  %1802 = vmatprep.mubr.msk.bf16.mxu1 %vm2092_vm0, %v2090_v16 }
 0x367   : > { %975 = vmatpush1.bf16.msra.mxu0 %v2203_v21  ;;  %1789 = vmatpush3.bf16.msra.mxu1 %v2230_v28 }
 0x368   : > { %976 = vmatprep.subr.bf16.mxu0 %v2207_v22  ;;  %1790 = vmatprep.subr.bf16.mxu1 %v2090_v16 }
 0x36b   : > { %977 = vmatpush1.bf16.msra.mxu0 %v2211_v23  ;;  %1791 = vmatpush3.bf16.msra.mxu1 %v2243_v31 }
 0x36c   : > { %978 = vmatprep.subr.bf16.mxu0 %v2215_v24  ;;  %1792 = vmatprep.subr.bf16.mxu1 %v2090_v16 }
 0x36f   : > { %979 = vmatpush1.bf16.msra.mxu0 %v2222_v26  ;;  %1793 = vmatpush3.bf16.msra.mxu1 %v2256_v34 }
 0x370   : > { %980 = vmatprep.subr.bf16.mxu0 %v2225_v27  ;;  %1794 = vmatprep.subr.bf16.mxu1 %v2090_v16 }
 0x373   : > { %981 = vmatpush1.bf16.msra.mxu0 %v2234_v29  ;;  %1795 = vmatpush3.bf16.msra.mxu1 %v2269_v37 }
 0x374   : > { %982 = vmatprep.subr.bf16.mxu0 %v2238_v30  ;;  %1796 = vmatprep.subr.bf16.mxu1 %v2090_v16 }
 0x377   : > { %983 = vmatpush1.bf16.msra.mxu0 %v2248_v32  ;;  %1797 = vmatpush3.bf16.msra.mxu1 %v2279_v39 }
 0x378   : > { %984 = vmatprep.subr.bf16.mxu0 %v2252_v33  ;;  %1798 = vmatprep.subr.bf16.mxu1 %v2090_v16 }
 0x37b   : > { %985 = vmatpush1.bf16.msra.mxu0 %v2261_v35  ;;  %1799 = vmatpush3.bf16.msra.mxu1 %v2285_v40 }
 0x37c   : > { %986 = vmatprep.subr.bf16.mxu0 %v2265_v36  ;;  %1800 = vmatprep.subr.bf16.mxu1 %v2090_v16 }
 0x37f   : > { %987 = vmatpush1.bf16.msra.mxu0 %v2274_v38  ;;  %1801 = vmatpush3.bf16.msra.mxu1 %v2293_v42 }
 0x380   : > { %1085 = vmatprep.subr.bf16.mxu0 %v2192_v18  ;;  %1806 = vmatprep.subr.bf16.mxu1 %v2090_v16 }
 0x435   : > { %v893_v53 = vpop.f32.mrb[12].mxu0  ;;  %v934_v54 = vpop.f32.mrb[12].mxu1 }
 0x436   : > { %v894_v55 = vadd.f32 %v893_v53, %v2345_v49  ;;  %v895_v56 = vpop.f32.mrb[13].mxu0  ;;  %v1784_v57 = vpop.f32.mrb[13].mxu1  ;;  %v935_v11 = vadd.f32 %v934_v54, %v2351_v6  ;;  %v966_v53 = vld [vmem:[%s965_s8] sm:$0xff] }
 0x437   : > { %v896_v59 = vadd.f32 %v895_v56, %v2347_v50  ;;  %v897_v60 = vpop.f32.mrb[14].mxu0  ;;  %v937_v61 = vpop.f32.mrb[14].mxu1  ;;  %v968_v54 = vunpack.c.l.bf16 %v966_v53 }
 0x438   : > { %v940_v62 = vadd.f32 %v894_v55, %v855_v52  ;;  %v898_v63 = vpop.f32.mrb[15].mxu0  ;;  %v1785_v0 = vpop.f32.mrb[15].mxu1  ;;  %v969_v60 = vunpack.c.h.bf16 %v966_v53 }
 0x439   : > { %v947_v2 = vadd.f32 %v896_v59, %v856_v58 }
 0x43a   : > { %v1609_v1 = vmul.f32 -1.442695, %v940_v62 }
 0x43b   : > { %v1610_v3 = vmul.f32 -1.442695, %v947_v2 }
 0x43c   : > { %1976 = vpow2.f32 %v1609_v1 }
 0x43d   : > { %1978 = vpow2.f32 %v1610_v3 }
 0x446   : > { %v1977_v4 = vpop.eup %1976 }
 0x447   : > { %v944_v5 = vadd.f32 1.0, %v1977_v4  ;;  %v1979_v7 = vpop.eup %1978 }
 0x448   : > { %v951_v9 = vadd.f32 1.0, %v1979_v7 }
 0x449   : > { %1980 = vrcp.f32 %v944_v5 }
 0x44a   : > { %1982 = vrcp.f32 %v951_v9  ;;  %v967_v9 = vld [vmem:[%s965_s8 + $0x8] sm:$0xf] }
 0x453   : > { %v1981_v12 = vpop.eup %1980 }
 0x454   : > { %v954_v13 = vmul.f32 %v1981_v12, %v935_v11  ;;  %v1983_v15 = vpop.eup %1982  ;;  %v970_v11 = vunpack.c.l.bf16 %v967_v9  ;;  %v2033_v9 = vld [vmem:[%s2189_s5 + $0x30] ss:$12 sps:$4 sm:$0xff]  }
 0x455   : > { %v957_v41 = vsub.f32 1.0, %v1983_v15  ;;  %v959_v48 = vmul.f32 %v1983_v15, %v2447_v46 }
 0x456   : > { %v955_v14 = vadd.f32 %v954_v13, %v857_v10 }
 0x458   : > { %1984 = vtanh.f32 %v955_v14 }
 0x462   : > { %v1985_v43 = vpop.eup %1984 }
 0x463   : > { %v958_v45 = vmul.f32 %v1985_v43, %v957_v41 }
 0x465   : > { %v2493_v51 = vadd.f32 %v959_v48, %v958_v45 }
 0x467   : > { %v971_v52 = vpack.c.bf16 %v2493_v51, %v2493_v51 }
 0x469   : > { %1005 = vmatmul.mubr.bf16.vlgmr.msra.gmra.mrb[16].mxu0 %v971_v52  ;;  %1803 = vmatmul.mubr.bf16.vlgmr.msra.gmra.mrb[16].mxu1 %v971_v52 }
 0x46a   : > { %1086 = vmatpush1.bf16.msra.mxu0 %v2195_v19  ;;  %1807 = vmatpush3.bf16.msra.mxu1 %v2218_v25 }
 0x46b   : > { %1087 = vmatprep.subr.bf16.mxu0 %v2199_v20  ;;  %1808 = vmatprep.subr.bf16.mxu1 %v2090_v16 }
 0x46c   : > { %1117 = vmatprep.mubr.bf16.mxu0 %v2091_v17  ;;  %1822 = vmatprep.mubr.msk.bf16.mxu1 %vm2092_vm0, %v2090_v16 }
 0x46e   : > { %1088 = vmatpush1.bf16.msra.mxu0 %v2203_v21  ;;  %1809 = vmatpush3.bf16.msra.mxu1 %v2230_v28 }
 0x46f   : > { %1089 = vmatprep.subr.bf16.mxu0 %v2207_v22  ;;  %1810 = vmatprep.subr.bf16.mxu1 %v2090_v16 }
 0x472   : > { %1090 = vmatpush1.bf16.msra.mxu0 %v2211_v23  ;;  %1811 = vmatpush3.bf16.msra.mxu1 %v2243_v31 }
 0x473   : > { %1091 = vmatprep.subr.bf16.mxu0 %v2215_v24  ;;  %1812 = vmatprep.subr.bf16.mxu1 %v2090_v16 }
 0x476   : > { %1092 = vmatpush1.bf16.msra.mxu0 %v2222_v26  ;;  %1813 = vmatpush3.bf16.msra.mxu1 %v2256_v34 }
 0x477   : > { %1093 = vmatprep.subr.bf16.mxu0 %v2225_v27  ;;  %1814 = vmatprep.subr.bf16.mxu1 %v2090_v16 }
 0x47a   : > { %1094 = vmatpush1.bf16.msra.mxu0 %v2234_v29  ;;  %1815 = vmatpush3.bf16.msra.mxu1 %v2269_v37 }
 0x47b   : > { %1095 = vmatprep.subr.bf16.mxu0 %v2238_v30  ;;  %1816 = vmatprep.subr.bf16.mxu1 %v2090_v16 }
 0x47e   : > { %1096 = vmatpush1.bf16.msra.mxu0 %v2248_v32  ;;  %1817 = vmatpush3.bf16.msra.mxu1 %v2279_v39 }
 0x47f   : > { %1097 = vmatprep.subr.bf16.mxu0 %v2252_v33  ;;  %1818 = vmatprep.subr.bf16.mxu1 %v2090_v16 }
 0x482   : > { %1098 = vmatpush1.bf16.msra.mxu0 %v2261_v35  ;;  %1819 = vmatpush3.bf16.msra.mxu1 %v2285_v40 }
 0x483   : > { %1099 = vmatprep.subr.bf16.mxu0 %v2265_v36  ;;  %1820 = vmatprep.subr.bf16.mxu1 %v2090_v16 }
 0x486   : > { %1100 = vmatpush1.bf16.msra.mxu0 %v2274_v38  ;;  %1821 = vmatpush3.bf16.msra.mxu1 %v2293_v42 }
 0x487   : > { %1198 = vmatprep.subr.bf16.mxu0 %v2192_v18  ;;  %1826 = vmatprep.subr.bf16.mxu1 %v2090_v16 }
 0x53c   : > { %v1006_v55 = vpop.f32.mrb[16].mxu0  ;;  %v1047_v56 = vpop.f32.mrb[16].mxu1 }
 0x53d   : > { %v1007_v57 = vadd.f32 %v1006_v55, %v2345_v49  ;;  %v1008_v58 = vpop.f32.mrb[17].mxu0  ;;  %v1804_v59 = vpop.f32.mrb[17].mxu1  ;;  %v1048_v12 = vadd.f32 %v1047_v56, %v2351_v6 }
 0x53e   : > { %v1009_v61 = vadd.f32 %v1008_v58, %v2347_v50  ;;  %v1010_v62 = vpop.f32.mrb[18].mxu0  ;;  %v1050_v63 = vpop.f32.mrb[18].mxu1 }
 0x53f   : > { %v1053_v18 = vadd.f32 %v1007_v57, %v968_v54  ;;  %v1011_v0 = vpop.f32.mrb[19].mxu0  ;;  %v1805_v1 = vpop.f32.mrb[19].mxu1 }
 0x540   : > { %v1060_v3 = vadd.f32 %v1009_v61, %v969_v60 }
 0x541   : > { %v1612_v2 = vmul.f32 -1.442695, %v1053_v18 }
 0x542   : > { %v1613_v4 = vmul.f32 -1.442695, %v1060_v3  ;;  %v2028_v3 = vld [vmem:[%s2189_s5 + $0x8] ss:$12 sps:$4 sm:$0xff]  }
 0x543   : > { %1986 = vpow2.f32 %v1612_v2  ;;  %v2027_v2 = vld [vmem:[%s2189_s5] ss:$12 sps:$4 sm:$0xff]  }
 0x544   : > { %1988 = vpow2.f32 %v1613_v4  ;;  %v2029_v4 = vld [vmem:[%s2189_s5 + $0x1c] ss:$12 sps:$4 sm:$0xff]  }
 0x54d   : > { %v1987_v5 = vpop.eup %1986 }
 0x54e   : > { %v1057_v7 = vadd.f32 1.0, %v1987_v5  ;;  %v1989_v8 = vpop.eup %1988  ;;  %v2030_v5 = vld [vmem:[%s2189_s5 + $0x18] ss:$12 sps:$4 sm:$0xff]  }
 0x54f   : > { %v1064_v10 = vadd.f32 1.0, %v1989_v8  ;;  %v2032_v8 = vld [vmem:[%s2189_s5 + $0x34] ss:$12 sps:$4 sm:$0xff]  }
 0x550   : > { %1990 = vrcp.f32 %v1057_v7  ;;  %v2031_v7 = vld [vmem:[%s2189_s5 + $0x20] ss:$12 sps:$4 sm:$0xff]  }
 0x551   : > { %1992 = vrcp.f32 %v1064_v10  ;;  %v2034_v10 = vld [vmem:[%s2189_s5 + $0x38] ss:$12 sps:$4 sm:$0xff]  }
 0x55a   : > { %v1991_v13 = vpop.eup %1990 }
 0x55b   : > { %v1067_v14 = vmul.f32 %v1991_v13, %v1048_v12  ;;  %v1993_v41 = vpop.eup %1992  ;;  %v2037_v12 = vld [vmem:[%s2189_s5 + $0x50] ss:$12 sps:$4 sm:$0xff]  }
 0x55c   : > { %v1070_v43 = vsub.f32 1.0, %v1993_v41  ;;  %v1072_v52 = vmul.f32 %v1993_v41, %v2493_v51  ;;  %v2038_v13 = vld [vmem:[%s2189_s5 + $0x64] ss:$12 sps:$4 sm:$0xff]   ;;  %v2041_v41 = vld [vmem:[%s2189_s5 + $0x7c] ss:$12 sps:$4 sm:$0xff]  }
 0x55d   : > { %v1068_v15 = vadd.f32 %v1067_v14, %v970_v11  ;;  %v2036_v11 = vld [vmem:[%s2189_s5 + $0x48] ss:$12 sps:$4 sm:$0xff]   ;;  %v2039_v14 = vld [vmem:[%s2189_s5 + $0x60] ss:$12 sps:$4 sm:$0xff]  }
 0x55f   : > { %1994 = vtanh.f32 %v1068_v15  ;;  %v2040_v15 = vld [vmem:[%s2189_s5 + $0x68] ss:$12 sps:$4 sm:$0xff]  }
 0x569   : > { %v1995_v45 = vpop.eup %1994 }
 0x56a   : > { %v1071_v48 = vmul.f32 %v1995_v45, %v1070_v43  ;;  %v2042_v43 = vld [vmem:[%s2189_s5 + $0x78] ss:$12 sps:$4 sm:$0xff]   ;;  %v2043_v45 = vld [vmem:[%s2189_s5 + $0x80] ss:$12 sps:$4 sm:$0xff]  }
 0x56c   : > { %v2539_v53 = vadd.f32 %v1072_v52, %v1071_v48  ;;  %v2044_v48 = vld [vmem:[%s2189_s5 + $0x94] ss:$12 sps:$4 sm:$0xff]   ;;  %v2045_v52 = vld [vmem:[%s2189_s5 + $0x90] ss:$12 sps:$4 sm:$0xff]  }
 0x56e   : > { %v1084_v54 = vpack.c.bf16 %v2539_v53, %v2539_v53 }
 0x570   : > { %1118 = vmatmul.mubr.bf16.vlgmr.msra.gmra.mrb[20].mxu0 %v1084_v54  ;;  %1823 = vmatmul.mubr.bf16.vlgmr.msra.gmra.mrb[20].mxu1 %v1084_v54  ;;  %v2046_v54 = vld [vmem:[%s2189_s5 + $0x98] ss:$12 sps:$4 sm:$0xff]  }
 0x571   : > { %1199 = vmatpush1.bf16.msra.mxu0 %v2195_v19  ;;  %1827 = vmatpush3.bf16.msra.mxu1 %v2218_v25  ;;  %v2026_v19 = vld [vmem:[%s2189_s5 + $0x4] ss:$12 sps:$4 sm:$0xff]  }
 0x572   : > { %1200 = vmatprep.subr.bf16.mxu0 %v2199_v20  ;;  %1828 = vmatprep.subr.bf16.mxu1 %v2090_v16  ;;  %v1079_v20 = vld [vmem:[%s1078_s11] sm:$0xff] }
 0x573   : > { %1230 = vmatprep.mubr.bf16.mxu0 %v2091_v17  ;;  %1842 = vmatprep.mubr.msk.bf16.mxu1 %vm2092_vm0, %v2090_v16 }
 0x575   : > { %1201 = vmatpush1.bf16.msra.mxu0 %v2203_v21  ;;  %1829 = vmatpush3.bf16.msra.mxu1 %v2230_v28  ;;  %v1081_v21 = vunpack.c.l.bf16 %v1079_v20 }
 0x576   : > { %1202 = vmatprep.subr.bf16.mxu0 %v2207_v22  ;;  %1830 = vmatprep.subr.bf16.mxu1 %v2090_v16 }
 0x579   : > { %1203 = vmatpush1.bf16.msra.mxu0 %v2211_v23  ;;  %1831 = vmatpush3.bf16.msra.mxu1 %v2243_v31 }
 0x57a   : > { %1204 = vmatprep.subr.bf16.mxu0 %v2215_v24  ;;  %1832 = vmatprep.subr.bf16.mxu1 %v2090_v16 }
 0x57d   : > { %1205 = vmatpush1.bf16.msra.mxu0 %v2222_v26  ;;  %1833 = vmatpush3.bf16.msra.mxu1 %v2256_v34 }
 0x57e   : > { %1206 = vmatprep.subr.bf16.mxu0 %v2225_v27  ;;  %1834 = vmatprep.subr.bf16.mxu1 %v2090_v16  ;;  %v1082_v27 = vunpack.c.h.bf16 %v1079_v20  ;;  %v2048_v20 = vld [vmem:[%s2189_s5 + $0xa8] ss:$12 sps:$4 sm:$0xff]  }
 0x581   : > { %1207 = vmatpush1.bf16.msra.mxu0 %v2234_v29  ;;  %1835 = vmatpush3.bf16.msra.mxu1 %v2269_v37 }
 0x582   : > { %1208 = vmatprep.subr.bf16.mxu0 %v2238_v30  ;;  %1836 = vmatprep.subr.bf16.mxu1 %v2090_v16 }
 0x585   : > { %1209 = vmatpush1.bf16.msra.mxu0 %v2248_v32  ;;  %1837 = vmatpush3.bf16.msra.mxu1 %v2279_v39 }
 0x586   : > { %1210 = vmatprep.subr.bf16.mxu0 %v2252_v33  ;;  %1838 = vmatprep.subr.bf16.mxu1 %v2090_v16 }
 0x589   : > { %1211 = vmatpush1.bf16.msra.mxu0 %v2261_v35  ;;  %1839 = vmatpush3.bf16.msra.mxu1 %v2285_v40  ;;  %v1080_v40 = vld [vmem:[%s1078_s11 + $0x8] sm:$0xf] }
 0x58a   : > { %1212 = vmatprep.subr.bf16.mxu0 %v2265_v36  ;;  %1840 = vmatprep.subr.bf16.mxu1 %v2090_v16  ;;  %v1083_v55 = vunpack.c.l.bf16 %v1080_v40 }
 0x58d   : > { %1213 = vmatpush1.bf16.msra.mxu0 %v2274_v38  ;;  %1841 = vmatpush3.bf16.msra.mxu1 %v2293_v42 }
 0x58e   : > { %1311 = vmatprep.subr.bf16.mxu0 %v2026_v19  ;;  %1846 = vmatprep.subr.bf16.mxu1 %v2090_v16  ;;  %v2047_v19 = vld [vmem:[%s2189_s5 + $0xac] ss:$12 sps:$4 sm:$0xff]  }
 0x643   : > { %v1119_v22 = vpop.f32.mrb[20].mxu0  ;;  %v1160_v23 = vpop.f32.mrb[20].mxu1 }
 0x644   : > { %v1120_v24 = vadd.f32 %v1119_v22, %v2345_v49  ;;  %v1121_v25 = vpop.f32.mrb[21].mxu0  ;;  %v1824_v26 = vpop.f32.mrb[21].mxu1  ;;  %v1161_v56 = vadd.f32 %v1160_v23, %v2351_v6  ;;  %v1192_v22 = vld [vmem:[%s1191_s22] sm:$0xff] }
 0x645   : > { %v1122_v28 = vadd.f32 %v1121_v25, %v2347_v50  ;;  %v1123_v29 = vpop.f32.mrb[22].mxu0  ;;  %v1163_v30 = vpop.f32.mrb[22].mxu1  ;;  %v1194_v23 = vunpack.c.l.bf16 %v1192_v22 }
 0x646   : > { %v1166_v31 = vadd.f32 %v1120_v24, %v1081_v21  ;;  %v1124_v32 = vpop.f32.mrb[23].mxu0  ;;  %v1825_v33 = vpop.f32.mrb[23].mxu1  ;;  %v2049_v21 = vld [vmem:[%s2189_s5 + $0xb0] ss:$12 sps:$4 sm:$0xff]   ;;  %v1195_v29 = vunpack.c.h.bf16 %v1192_v22 }
 0x647   : > { %v1173_v35 = vadd.f32 %v1122_v28, %v1082_v27 }
 0x648   : > { %v1615_v34 = vmul.f32 -1.442695, %v1166_v31 }
 0x649   : > { %v1616_v36 = vmul.f32 -1.442695, %v1173_v35 }
 0x64a   : > { %1996 = vpow2.f32 %v1615_v34 }
 0x64b   : > { %1998 = vpow2.f32 %v1616_v36 }
 0x654   : > { %v1997_v37 = vpop.eup %1996 }
 0x655   : > { %v1170_v38 = vadd.f32 1.0, %v1997_v37  ;;  %v1999_v39 = vpop.eup %1998 }
 0x656   : > { %v1177_v42 = vadd.f32 1.0, %v1999_v39 }
 0x657   : > { %2000 = vrcp.f32 %v1170_v38 }
 0x658   : > { %2002 = vrcp.f32 %v1177_v42  ;;  %v1193_v42 = vld [vmem:[%s1191_s22 + $0x8] sm:$0xf] }
 0x661   : > { %v2001_v57 = vpop.eup %2000 }
 0x662   : > { %v1180_v58 = vmul.f32 %v2001_v57, %v1161_v56  ;;  %v2003_v60 = vpop.eup %2002  ;;  %v1196_v56 = vunpack.c.l.bf16 %v1193_v42 }
 0x663   : > { %v1183_v61 = vsub.f32 1.0, %v2003_v60  ;;  %v1185_v18 = vmul.f32 %v2003_v60, %v2539_v53 }
 0x664   : > { %v1181_v59 = vadd.f32 %v1180_v58, %v1083_v55 }
 0x666   : > { %2004 = vtanh.f32 %v1181_v59 }
 0x670   : > { %v2005_v62 = vpop.eup %2004 }
 0x671   : > { %v1184_v63 = vmul.f32 %v2005_v62, %v1183_v61 }
 0x673   : > { %v2585_v0 = vadd.f32 %v1185_v18, %v1184_v63 }
 0x675   : > { %v1197_v1 = vpack.c.bf16 %v2585_v0, %v2585_v0 }
 0x677   : > { %1231 = vmatmul.mubr.bf16.vlgmr.msra.gmra.mrb[24].mxu0 %v1197_v1  ;;  %1843 = vmatmul.mubr.bf16.vlgmr.msra.gmra.mrb[24].mxu1 %v1197_v1 }
 0x678   : > { %1312 = vmatpush1.bf16.msra.mxu0 %v2027_v2  ;;  %1847 = vmatpush3.bf16.msra.mxu1 %v2028_v3 }
 0x679   : > { %1313 = vmatprep.subr.bf16.mxu0 %v2029_v4  ;;  %1848 = vmatprep.subr.bf16.mxu1 %v2090_v16 }
 0x67a   : > { %1343 = vmatprep.mubr.bf16.mxu0 %v2091_v17  ;;  %1862 = vmatprep.mubr.msk.bf16.mxu1 %vm2092_vm0, %v2090_v16  ;;  %v2035_v17 = vld [vmem:[%s2189_s5 + $0x4c] ss:$12 sps:$4 sm:$0xff]   ;;  %s1301_s5 = scalar_select %p365_p10, 7, 0 }
 0x67c   : > { %1314 = vmatpush1.bf16.msra.mxu0 %v2030_v5  ;;  %1849 = vmatpush3.bf16.msra.mxu1 %v2031_v7  ;;  %s1633_s12 = smul.u32 12, %s1301_s5 }
 0x67d   : > { %1315 = vmatprep.subr.bf16.mxu0 %v2032_v8  ;;  %1850 = vmatprep.subr.bf16.mxu1 %v2090_v16 }
 0x67e   : > { %s1304_s23 = scalar_lea.vmem %s2339_s21, %s1633_s12 [#allocation4] }
 0x67f   : > { %v1305_v4 = vld [vmem:[%s1304_s23] sm:$0xff] }
 0x680   : > { %1316 = vmatpush1.bf16.msra.mxu0 %v2033_v9  ;;  %1851 = vmatpush3.bf16.msra.mxu1 %v2034_v10  ;;  %v1307_v5 = vunpack.c.l.bf16 %v1305_v4 }
 0x681   : > { %1317 = vmatprep.subr.bf16.mxu0 %v2035_v17  ;;  %1852 = vmatprep.subr.bf16.mxu1 %v2090_v16 }
 0x684   : > { %1318 = vmatpush1.bf16.msra.mxu0 %v2036_v11  ;;  %1853 = vmatpush3.bf16.msra.mxu1 %v2037_v12  ;;  %v1308_v11 = vunpack.c.h.bf16 %v1305_v4 }
 0x685   : > { %1319 = vmatprep.subr.bf16.mxu0 %v2038_v13  ;;  %1854 = vmatprep.subr.bf16.mxu1 %v2090_v16 }
 0x688   : > { %1320 = vmatpush1.bf16.msra.mxu0 %v2039_v14  ;;  %1855 = vmatpush3.bf16.msra.mxu1 %v2040_v15 }
 0x689   : > { %1321 = vmatprep.subr.bf16.mxu0 %v2041_v41  ;;  %1856 = vmatprep.subr.bf16.mxu1 %v2090_v16 }
 0x68c   : > { %1322 = vmatpush1.bf16.msra.mxu0 %v2042_v43  ;;  %1857 = vmatpush3.bf16.msra.mxu1 %v2043_v45 }
 0x68d   : > { %1323 = vmatprep.subr.bf16.mxu0 %v2044_v48  ;;  %1858 = vmatprep.subr.bf16.mxu1 %v2090_v16 }
 0x690   : > { %1324 = vmatpush1.bf16.msra.mxu0 %v2045_v52  ;;  %1859 = vmatpush3.bf16.msra.mxu1 %v2046_v54 }
 0x691   : > { %1325 = vmatprep.subr.bf16.mxu0 %v2047_v19  ;;  %1860 = vmatprep.subr.bf16.mxu1 %v2090_v16 }
 0x694   : > { %1326 = vmatpush1.bf16.msra.mxu0 %v2048_v20  ;;  %1861 = vmatpush3.bf16.msra.mxu1 %v2049_v21 }
 0x74a   : > { %v1232_v24 = vpop.f32.mrb[24].mxu0  ;;  %v1273_v25 = vpop.f32.mrb[24].mxu1 }
 0x74b   : > { %v1233_v26 = vadd.f32 %v1232_v24, %v2345_v49  ;;  %v1234_v27 = vpop.f32.mrb[25].mxu0  ;;  %v1844_v28 = vpop.f32.mrb[25].mxu1  ;;  %v1274_v57 = vadd.f32 %v1273_v25, %v2351_v6 }
 0x74c   : > { %v1235_v30 = vadd.f32 %v1234_v27, %v2347_v50  ;;  %v1236_v16 = vpop.f32.mrb[26].mxu0  ;;  %v1276_v31 = vpop.f32.mrb[26].mxu1 }
 0x74d   : > { %v1279_v32 = vadd.f32 %v1233_v26, %v1194_v23  ;;  %v1237_v33 = vpop.f32.mrb[27].mxu0  ;;  %v1845_v34 = vpop.f32.mrb[27].mxu1  ;;  %v735_v26 = vadd.f32 %v2401_v47, %v2355_v44 }
 0x74e   : > { %v1286_v36 = vadd.f32 %v1235_v30, %v1195_v29 }
 0x74f   : > { %v1618_v35 = vmul.f32 -1.442695, %v1279_v32  ;;  %v848_v27 = vadd.f32 %v2447_v46, %v735_v26 }
 0x750   : > { %v1619_v37 = vmul.f32 -1.442695, %v1286_v36 }
 0x751   : > { %2006 = vpow2.f32 %v1618_v35  ;;  %v961_v29 = vadd.f32 %v2493_v51, %v848_v27 }
 0x752   : > { %2008 = vpow2.f32 %v1619_v37 }
 0x753   : > { %v1074_v30 = vadd.f32 %v2539_v53, %v961_v29 }
 0x75b   : > { %v2007_v38 = vpop.eup %2006 }
 0x75c   : > { %v1283_v39 = vadd.f32 1.0, %v2007_v38  ;;  %v2009_v40 = vpop.eup %2008 }
 0x75d   : > { %v1290_v55 = vadd.f32 1.0, %v2009_v40 }
 0x75e   : > { %2010 = vrcp.f32 %v1283_v39 }
 0x75f   : > { %2012 = vrcp.f32 %v1290_v55 }
 0x768   : > { %v2011_v58 = vpop.eup %2010 }
 0x769   : > { %v1293_v59 = vmul.f32 %v2011_v58, %v1274_v57  ;;  %v2013_v61 = vpop.eup %2012 }
 0x76a   : > { %v1296_v62 = vsub.f32 1.0, %v2013_v61  ;;  %v1298_v1 = vmul.f32 %v2013_v61, %v2585_v0 }
 0x76b   : > { %v1294_v60 = vadd.f32 %v1293_v59, %v1196_v56 }
 0x76d   : > { %2014 = vtanh.f32 %v1294_v60 }
 0x777   : > { %v2015_v63 = vpop.eup %2014 }
 0x778   : > { %v1297_v18 = vmul.f32 %v2015_v63, %v1296_v62 }
 0x77a   : > { %v1299_v2 = vadd.f32 %v1298_v1, %v1297_v18 }
 0x77c   : > { %v1310_v3 = vpack.c.bf16 %v1299_v2, %v1299_v2 }
 0x77e   : > { %1344 = vmatmul.mubr.bf16.vlgmr.msra.gmra.mrb[28].mxu0 %v1310_v3  ;;  %1863 = vmatmul.mubr.bf16.vlgmr.msra.gmra.mrb[28].mxu1 %v1310_v3 }
 0x851   : > { %v1345_v7 = vpop.f32.mrb[28].mxu0  ;;  %v1386_v8 = vpop.f32.mrb[28].mxu1 }
 0x852   : > { %v1346_v9 = vadd.f32 %v1345_v7, %v2345_v49  ;;  %v1347_v10 = vpop.f32.mrb[29].mxu0  ;;  %v1864_v17 = vpop.f32.mrb[29].mxu1  ;;  %v1306_v49 = vld [vmem:[%s1304_s23 + $0x8] sm:$0xf]  ;;  %v1387_v23 = vadd.f32 %v1386_v8, %v2351_v6  ;;  %v1187_v6 = vadd.f32 %v2585_v0, %v1074_v30 }
 0x853   : > { %v1348_v12 = vadd.f32 %v1347_v10, %v2347_v50  ;;  %v1349_v13 = vpop.f32.mrb[30].mxu0  ;;  %v1389_v14 = vpop.f32.mrb[30].mxu1  ;;  %v1309_v22 = vunpack.c.l.bf16 %v1306_v49 }
 0x854   : > { %v1392_v15 = vadd.f32 %v1346_v9, %v1307_v5  ;;  %v1350_v41 = vpop.f32.mrb[31].mxu0  ;;  %v1865_v43 = vpop.f32.mrb[31].mxu1  ;;  %v1300_v34 = vadd.f32 %v1299_v2, %v1187_v6 }
 0x855   : > { %v1399_v48 = vadd.f32 %v1348_v12, %v1308_v11 }
 0x856   : > { %v1621_v45 = vmul.f32 -1.442695, %v1392_v15 }
 0x857   : > { %v1622_v52 = vmul.f32 -1.442695, %v1399_v48 }
 0x858   : > { %2016 = vpow2.f32 %v1621_v45 }
 0x859   : > { %2018 = vpow2.f32 %v1622_v52 }
 0x862   : > { %v2017_v54 = vpop.eup %2016 }
 0x863   : > { %v1396_v19 = vadd.f32 1.0, %v2017_v54  ;;  %v2019_v20 = vpop.eup %2018 }
 0x864   : > { %v1403_v21 = vadd.f32 1.0, %v2019_v20 }
 0x865   : > { %2020 = vrcp.f32 %v1396_v19 }
 0x866   : > { %2022 = vrcp.f32 %v1403_v21 }
 0x86f   : > { %v2021_v50 = vpop.eup %2020 }
 0x870   : > { %v1406_v24 = vmul.f32 %v2021_v50, %v1387_v23  ;;  %v2023_v28 = vpop.eup %2022 }
 0x871   : > { %v1409_v16 = vsub.f32 1.0, %v2023_v28  ;;  %v1411_v33 = vmul.f32 %v2023_v28, %v1299_v2 }
 0x872   : > { %v1407_v25 = vadd.f32 %v1406_v24, %v1309_v22 }
 0x874   : > { %2024 = vtanh.f32 %v1407_v25 }
 0x87e   : > { %v2025_v31 = vpop.eup %2024 }
 0x87f   : > { %v1410_v32 = vmul.f32 %v2025_v31, %v1409_v16 }
 0x881   : > { %v1412_v35 = vadd.f32 %v1411_v33, %v1410_v32 }
 0x883   : > { %v1413_v36 = vadd.f32 %v1412_v35, %v1300_v34 }
 0x885   : > { %v1419_v44 = vmul.f32 0.125, %v1413_v36 }
 0x887   : > { %1420 = vst [vmem:[%s322_s25] sm:$0xff] %v1419_v44 }
 0x888 PF: > { %s13_s16 = sadd.s32 1, %s2088_s16   ;;  %s2664_s12 = smov %s2076_s13 }
 0x889   : > { %p10_p11 = scmp.ge.s32.totalorder %s13_s16, 4   ;;  %s2665_s13 = smov %s2149_s20 }
 0x88a   : > { %s2666_s14 = smov %s2084_s15  ;;  %s2667_s15 = smov %s2669_s17 }
 0x88b   :  { %12 = sbr.rel (!%p10_p11) target bundleno = 3 (0x3), region = 121 }

</bundles_post_ra>
